<compile_context>
chip_gen: v5e
topology: v5e:2x2
jax: 0.10.0
libtpu: 0.0.40
codegen_flags: <defaults>
</compile_context>

<pallas_src>
import functools

import jax
import jax.numpy as jnp
from jax.experimental import pallas as pl
from jax.experimental.pallas import tpu as pltpu

BN_EPS = 1e-5


# --------------------------- fused GEMM + affine kernels ----------------------

def _gemm_bias_kernel(x_ref, w_ref, b_ref, o_ref, *, relu):
    # x_ref: (1, TM, K) bf16   w_ref: (K, Cout) bf16   b_ref: (1, Cout) f32
    acc = jnp.dot(x_ref[0], w_ref[...], preferred_element_type=jnp.float32)
    y = acc + b_ref[...]
    if relu:
        y = jnp.maximum(y, 0.0)
    o_ref[0] = y.astype(o_ref.dtype)


def _gemm_bias_add_relu_kernel(x_ref, w_ref, b_ref, res_ref, o_ref):
    # conv2 + bn2 + residual add + final ReLU, fully fused.
    acc = jnp.dot(x_ref[0], w_ref[...], preferred_element_type=jnp.float32)
    y = acc + b_ref[...] + res_ref[0].astype(jnp.float32)
    o_ref[0] = jnp.maximum(y, 0.0).astype(o_ref.dtype)


def _choose_tile_m(m, target=128):
    if m <= target:
        return m
    for t in range(target, 7, -8):        # largest multiple-of-8 divisor <= target
        if m % t == 0:
            return t
    return m                              # fallback: whole axis in one block


def _fused_gemm(patches, w, bias, *, relu, residual=None, tile_m=128):
    # patches: (N, M, K) bf16, w: (K, Cout) bf16, bias: (1, Cout) f32,
    # residual: optional (N, M, Cout) f32.  Returns (N, M, Cout) f32.
    N, M, K = patches.shape
    Cout = w.shape[1]
    tm = _choose_tile_m(M, tile_m)
    grid = (N, M // tm)

    x_spec = pl.BlockSpec((1, tm, K), lambda n, m: (n, m, 0))
    w_spec = pl.BlockSpec((K, Cout), lambda n, m: (0, 0))       # resident weights
    b_spec = pl.BlockSpec((1, Cout), lambda n, m: (0, 0))
    o_spec = pl.BlockSpec((1, tm, Cout), lambda n, m: (n, m, 0))
    cparams = pltpu.CompilerParams(
        dimension_semantics=("parallel", "parallel"),
        vmem_limit_bytes=48 * 1024 * 1024)
    out_shape = jax.ShapeDtypeStruct((N, M, Cout), jnp.float32)

    if residual is None:
        return pl.pallas_call(
            functools.partial(_gemm_bias_kernel, relu=relu),
            out_shape=out_shape,
            grid=grid,
            in_specs=[x_spec, w_spec, b_spec],
            out_specs=o_spec,
            compiler_params=cparams,
        )(patches, w, bias)

    r_spec = pl.BlockSpec((1, tm, Cout), lambda n, m: (n, m, 0))
    return pl.pallas_call(
        _gemm_bias_add_relu_kernel,
        out_shape=out_shape,
        grid=grid,
        in_specs=[x_spec, w_spec, b_spec, r_spec],
        out_specs=o_spec,
        compiler_params=cparams,
    )(patches, w, bias, residual)


# ------------------------------ im2col (wrapper) ------------------------------

def _im2col(x, ksize, stride, padding):
    # x: (N, H, W, C) -> (N, Ho*Wo, ksize*ksize*C); taps ordered (dy, dx) row-major
    # so they line up with the (k, k, Cin, Cout) -> (k*k*Cin, Cout) weight reshape.
    # Built with a single concatenate so the kernel sees one deep-K GEMM operand.
    N, H, W, C = x.shape
    Ho = (H + 2 * padding - ksize) // stride + 1
    Wo = (W + 2 * padding - ksize) // stride + 1
    xp = jnp.pad(x, ((0, 0), (padding, padding), (padding, padding), (0, 0)))
    taps = [xp[:, dy:dy + stride * Ho:stride, dx:dx + stride * Wo:stride, :]
            for dy in range(ksize) for dx in range(ksize)]
    patches = jnp.concatenate(taps, axis=-1)          # (N, Ho, Wo, k*k*C)
    return patches.reshape(N, Ho * Wo, ksize * ksize * C), Ho, Wo


# ------------------------------- parameters ------------------------------------

def _make_conv_bn(key, cin, cout, ksize, conv_has_bias=False):
    ks = jax.random.split(key, 6)
    fan_in = ksize * ksize * cin
    w = jax.random.normal(ks[0], (ksize, ksize, cin, cout), jnp.float32) / jnp.sqrt(fan_in)
    gamma = jax.random.uniform(ks[1], (cout,), jnp.float32, 0.5, 1.5)
    beta = jax.random.normal(ks[2], (cout,), jnp.float32) * 0.1
    rmean = jax.random.normal(ks[3], (cout,), jnp.float32) * 0.1
    rvar = jax.random.uniform(ks[4], (cout,), jnp.float32, 0.5, 1.5)
    scale = gamma / jnp.sqrt(rvar + BN_EPS)           # eval-mode BN fold
    bias = beta - rmean * scale
    if conv_has_bias:
        conv_b = jax.random.normal(ks[5], (cout,), jnp.float32) * 0.05
        bias = bias + conv_b * scale
    w_folded = (w * scale).reshape(fan_in, cout).astype(jnp.bfloat16)
    return w_folded, bias.reshape(1, cout)


def make_resblock_params(key, n_in, n_out, ksize, stride, padding):
    del padding  # weights don't depend on padding
    k1, k2, k3 = jax.random.split(key, 3)
    p = {}
    p["w1"], p["b1"] = _make_conv_bn(k1, n_in, n_out, ksize)   # conv1 (bias=False) + bn1
    p["w2"], p["b2"] = _make_conv_bn(k2, n_out, n_out, ksize)  # conv2 (bias=False) + bn2
    if n_in != n_out or stride != 1:
        # nn.Conv2d(n_in, n_out, 1, stride) (bias=True by default) + BatchNorm2d.
        p["shortcut"] = _make_conv_bn(k3, n_in, n_out, 1, conv_has_bias=True)
    else:
        p["shortcut"] = None
    return p


# --------------------------------- forward -------------------------------------

def resblock_forward(x, p, ksize, stride, padding):
    # x: (N, H, W, Cin) f32  ->  (N, Ho, Wo, Cout) f32
    N, H, W, Cin = x.shape

    # conv1 + bn1 + relu (one GEMM kernel)
    patches, Ho, Wo = _im2col(x, ksize, stride, padding)
    h = _fused_gemm(patches.astype(jnp.bfloat16), p["w1"], p["b1"], relu=True)

    # residual path
    if p["shortcut"] is not None:
        sw, sb = p["shortcut"]
        sub = x[:, ::stride, ::stride, :]             # 1x1 conv stride = subsample
        assert sub.shape[1] == Ho and sub.shape[2] == Wo, (sub.shape, Ho, Wo)
        residual = _fused_gemm(sub.reshape(N, Ho * Wo, Cin).astype(jnp.bfloat16),
                               sw, sb, relu=False)
    else:
        residual = x.reshape(N, H * W, Cin)

    # conv2 + bn2 + residual add + relu (single fused GEMM kernel)
    h = h.reshape(N, Ho, Wo, -1)
    patches2, Ho2, Wo2 = _im2col(h, ksize, 1, 1)      # module: Conv2d(..., stride=1, padding=1)
    out = _fused_gemm(patches2.astype(jnp.bfloat16), p["w2"], p["b2"],
                      relu=True, residual=residual)
    return out.reshape(N, Ho2, Wo2, -1)


@functools.partial(jax.jit, static_argnums=(0,))
def model_forward(cfgs, x_nchw, params):
    x = jnp.transpose(x_nchw, (0, 2, 3, 1)).astype(jnp.float32)   # NCHW -> NHWC
    for (n_in, n_out, ksize, stride, padding), p in zip(cfgs, params):
        x = resblock_forward(x, p, ksize, stride, padding)
    return jnp.transpose(x, (0, 3, 1, 2))                         # back to NCHW


if __name__ == "__main__":
    key = jax.random.PRNGKey(0)
    k_params, k_x = jax.random.split(key)

    # Two ResBlocks exercising both shortcut branches of the module:
    #   (n_in, n_out, kernel_size, stride, padding)
    cfgs = ((32, 32, 3, 1, 1),    # identity shortcut
            (32, 64, 3, 2, 1))    # 1x1-conv + BN projection shortcut
    params = []
    kp = k_params
    for cfg in cfgs:
        kp, sub = jax.random.split(kp)
        params.append(make_resblock_params(sub, *cfg))

    x = jax.random.normal(k_x, (2, 32, 16, 16), jnp.float32)      # NCHW, PyTorch-style
    out = model_forward(cfgs, x, params)
    out = jax.block_until_ready(out)

    assert out.shape == (2, 64, 8, 8), out.shape
    assert bool(jnp.all(jnp.isfinite(out)))
    assert bool(jnp.all(out >= 0.0))      # final ReLU
    print("KERNEL_OK")
</pallas_src>

<mosaic_0001>
module attributes {stable_mosaic.version = 11 : i64} {
  func.func @_gemm_bias_kernel(%arg0: i32, %arg1: i32, %arg2: memref<1x128x288xbf16, #tpu.memory_space<vmem>>, %arg3: memref<288x32xbf16, #tpu.memory_space<vmem>>, %arg4: memref<1x32xf32, #tpu.memory_space<vmem>>, %arg5: memref<1x128x32xf32, #tpu.memory_space<vmem>>) attributes {dimension_semantics = [#tpu.dimension_semantics<parallel>, #tpu.dimension_semantics<parallel>], iteration_bounds = array<i64: 2, 2>, scalar_prefetch = 0 : i64, scratch_operands = 0 : i64, tpu.core_type = #tpu.core_type<tc>, window_params = [{transform_indices = @transform_0, window_bounds = array<i64: 1, 128, 288>}, {pipeline_mode = #tpu.pipeline_mode<synchronous>, transform_indices = @transform_1, window_bounds = array<i64: 288, 32>}, {pipeline_mode = #tpu.pipeline_mode<synchronous>, transform_indices = @transform_2, window_bounds = array<i64: 1, 32>}, {transform_indices = @transform_3, window_bounds = array<i64: 1, 128, 32>}]} {
    %c0 = arith.constant 0 : index
    %c0_0 = arith.constant 0 : index
    %c0_1 = arith.constant 0 : index
    %0 = vector.load %arg2[%c0, %c0_0, %c0_1] : memref<1x128x288xbf16, #tpu.memory_space<vmem>>, vector<1x128x288xbf16>
    %1 = vector.shape_cast %0 : vector<1x128x288xbf16> to vector<128x288xbf16>
    %c0_2 = arith.constant 0 : index
    %c0_3 = arith.constant 0 : index
    %2 = vector.load %arg3[%c0_2, %c0_3] : memref<288x32xbf16, #tpu.memory_space<vmem>>, vector<288x32xbf16>
    %cst = arith.constant dense<0.000000e+00> : vector<128x32xf32>
    %3 = tpu.matmul %1, %2, %cst {dimension_numbers = #tpu.dot_dimension_numbers<[1], [0], [0], [1], [0, 0, 1, 1], [], []>} : vector<128x288xbf16>, vector<288x32xbf16>, vector<128x32xf32> -> vector<128x32xf32>
    %c0_4 = arith.constant 0 : index
    %c0_5 = arith.constant 0 : index
    %4 = vector.load %arg4[%c0_4, %c0_5] : memref<1x32xf32, #tpu.memory_space<vmem>>, vector<1x32xf32>
    %5 = vector.broadcast %4 : vector<1x32xf32> to vector<128x32xf32>
    %6 = arith.addf %3, %5 : vector<128x32xf32>
    %cst_6 = arith.constant 0.000000e+00 : f32
    %7 = vector.broadcast %cst_6 : f32 to vector<128x32xf32>
    %8 = arith.maximumf %6, %7 : vector<128x32xf32>
    %c0_7 = arith.constant 0 : index
    %c0_8 = arith.constant 0 : index
    %c0_9 = arith.constant 0 : index
    %9 = vector.load %arg5[%c0_7, %c0_8, %c0_9] : memref<1x128x32xf32, #tpu.memory_space<vmem>>, vector<1x128x32xf32>
    %10 = vector.shape_cast %9 : vector<1x128x32xf32> to vector<128x32xf32>
    %11 = vector.shape_cast %8 : vector<128x32xf32> to vector<1x128x32xf32>
    tpu.vector_store %arg5[%c0_7, %c0_8, %c0_9], %11 {strides = array<i32>} : memref<1x128x32xf32, #tpu.memory_space<vmem>>, vector<1x128x32xf32>,
    return
  }
  func.func @transform_0(%arg0: i32, %arg1: i32) -> (i32, i32, i32) {
    %c0_i32 = arith.constant 0 : i32
    %c0_i32_0 = arith.constant 0 : i32
    return %arg0, %arg1, %c0_i32 : i32, i32, i32
  }
  func.func @transform_1(%arg0: i32, %arg1: i32) -> (i32, i32) {
    %c0_i32 = arith.constant 0 : i32
    %c0_i32_0 = arith.constant 0 : i32
    %c0_i32_1 = arith.constant 0 : i32
    return %c0_i32, %c0_i32_0 : i32, i32
  }
  func.func @transform_2(%arg0: i32, %arg1: i32) -> (i32, i32) {
    %c0_i32 = arith.constant 0 : i32
    %c0_i32_0 = arith.constant 0 : i32
    %c0_i32_1 = arith.constant 0 : i32
    return %c0_i32, %c0_i32_0 : i32, i32
  }
  func.func @transform_3(%arg0: i32, %arg1: i32) -> (i32, i32, i32) {
    %c0_i32 = arith.constant 0 : i32
    %c0_i32_0 = arith.constant 0 : i32
    return %arg0, %arg1, %c0_i32 : i32, i32, i32
  }
}

module attributes {stable_mosaic.version = 11 : i64} {
  func.func @_gemm_bias_add_relu_kernel(%arg0: i32, %arg1: i32, %arg2: memref<1x128x288xbf16, #tpu.memory_space<vmem>>, %arg3: memref<288x32xbf16, #tpu.memory_space<vmem>>, %arg4: memref<1x32xf32, #tpu.memory_space<vmem>>, %arg5: memref<1x128x32xf32, #tpu.memory_space<vmem>>, %arg6: memref<1x128x32xf32, #tpu.memory_space<vmem>>) attributes {dimension_semantics = [#tpu.dimension_semantics<parallel>, #tpu.dimension_semantics<parallel>], iteration_bounds = array<i64: 2, 2>, scalar_prefetch = 0 : i64, scratch_operands = 0 : i64, tpu.core_type = #tpu.core_type<tc>, window_params = [{transform_indices = @transform_0, window_bounds = array<i64: 1, 128, 288>}, {pipeline_mode = #tpu.pipeline_mode<synchronous>, transform_indices = @transform_1, window_bounds = array<i64: 288, 32>}, {pipeline_mode = #tpu.pipeline_mode<synchronous>, transform_indices = @transform_2, window_bounds = array<i64: 1, 32>}, {transform_indices = @transform_3, window_bounds = array<i64: 1, 128, 32>}, {transform_indices = @transform_4, window_bounds = array<i64: 1, 128, 32>}]} {
    %c0 = arith.constant 0 : index
    %c0_0 = arith.constant 0 : index
    %c0_1 = arith.constant 0 : index
    %0 = vector.load %arg2[%c0, %c0_0, %c0_1] : memref<1x128x288xbf16, #tpu.memory_space<vmem>>, vector<1x128x288xbf16>
    %1 = vector.shape_cast %0 : vector<1x128x288xbf16> to vector<128x288xbf16>
    %c0_2 = arith.constant 0 : index
    %c0_3 = arith.constant 0 : index
    %2 = vector.load %arg3[%c0_2, %c0_3] : memref<288x32xbf16, #tpu.memory_space<vmem>>, vector<288x32xbf16>
    %cst = arith.constant dense<0.000000e+00> : vector<128x32xf32>
    %3 = tpu.matmul %1, %2, %cst {dimension_numbers = #tpu.dot_dimension_numbers<[1], [0], [0], [1], [0, 0, 1, 1], [], []>} : vector<128x288xbf16>, vector<288x32xbf16>, vector<128x32xf32> -> vector<128x32xf32>
    %c0_4 = arith.constant 0 : index
    %c0_5 = arith.constant 0 : index
    %4 = vector.load %arg4[%c0_4, %c0_5] : memref<1x32xf32, #tpu.memory_space<vmem>>, vector<1x32xf32>
    %5 = vector.broadcast %4 : vector<1x32xf32> to vector<128x32xf32>
    %6 = arith.addf %3, %5 : vector<128x32xf32>
    %c0_6 = arith.constant 0 : index
    %c0_7 = arith.constant 0 : index
    %c0_8 = arith.constant 0 : index
    %7 = vector.load %arg5[%c0_6, %c0_7, %c0_8] : memref<1x128x32xf32, #tpu.memory_space<vmem>>, vector<1x128x32xf32>
    %8 = vector.shape_cast %7 : vector<1x128x32xf32> to vector<128x32xf32>
    %9 = arith.addf %6, %8 : vector<128x32xf32>
    %cst_9 = arith.constant 0.000000e+00 : f32
    %10 = vector.broadcast %cst_9 : f32 to vector<128x32xf32>
    %11 = arith.maximumf %9, %10 : vector<128x32xf32>
    %c0_10 = arith.constant 0 : index
    %c0_11 = arith.constant 0 : index
    %c0_12 = arith.constant 0 : index
    %12 = vector.load %arg6[%c0_10, %c0_11, %c0_12] : memref<1x128x32xf32, #tpu.memory_space<vmem>>, vector<1x128x32xf32>
    %13 = vector.shape_cast %12 : vector<1x128x32xf32> to vector<128x32xf32>
    %14 = vector.shape_cast %11 : vector<128x32xf32> to vector<1x128x32xf32>
    tpu.vector_store %arg6[%c0_10, %c0_11, %c0_12], %14 {strides = array<i32>} : memref<1x128x32xf32, #tpu.memory_space<vmem>>, vector<1x128x32xf32>,
    return
  }
  func.func @transform_0(%arg0: i32, %arg1: i32) -> (i32, i32, i32) {
    %c0_i32 = arith.constant 0 : i32
    %c0_i32_0 = arith.constant 0 : i32
    return %arg0, %arg1, %c0_i32 : i32, i32, i32
  }
  func.func @transform_1(%arg0: i32, %arg1: i32) -> (i32, i32) {
    %c0_i32 = arith.constant 0 : i32
    %c0_i32_0 = arith.constant 0 : i32
    %c0_i32_1 = arith.constant 0 : i32
    return %c0_i32, %c0_i32_0 : i32, i32
  }
  func.func @transform_2(%arg0: i32, %arg1: i32) -> (i32, i32) {
    %c0_i32 = arith.constant 0 : i32
    %c0_i32_0 = arith.constant 0 : i32
    %c0_i32_1 = arith.constant 0 : i32
    return %c0_i32, %c0_i32_0 : i32, i32
  }
  func.func @transform_3(%arg0: i32, %arg1: i32) -> (i32, i32, i32) {
    %c0_i32 = arith.constant 0 : i32
    %c0_i32_0 = arith.constant 0 : i32
    return %arg0, %arg1, %c0_i32 : i32, i32, i32
  }
  func.func @transform_4(%arg0: i32, %arg1: i32) -> (i32, i32, i32) {
    %c0_i32 = arith.constant 0 : i32
    %c0_i32_0 = arith.constant 0 : i32
    return %arg0, %arg1, %c0_i32 : i32, i32, i32
  }
}

module attributes {stable_mosaic.version = 11 : i64} {
  func.func @_gemm_bias_kernel(%arg0: i32, %arg1: i32, %arg2: memref<1x64x288xbf16, #tpu.memory_space<vmem>>, %arg3: memref<288x64xbf16, #tpu.memory_space<vmem>>, %arg4: memref<1x64xf32, #tpu.memory_space<vmem>>, %arg5: memref<1x64x64xf32, #tpu.memory_space<vmem>>) attributes {dimension_semantics = [#tpu.dimension_semantics<parallel>, #tpu.dimension_semantics<parallel>], iteration_bounds = array<i64: 2, 1>, scalar_prefetch = 0 : i64, scratch_operands = 0 : i64, tpu.core_type = #tpu.core_type<tc>, window_params = [{transform_indices = @transform_0, window_bounds = array<i64: 1, 64, 288>}, {pipeline_mode = #tpu.pipeline_mode<synchronous>, transform_indices = @transform_1, window_bounds = array<i64: 288, 64>}, {pipeline_mode = #tpu.pipeline_mode<synchronous>, transform_indices = @transform_2, window_bounds = array<i64: 1, 64>}, {transform_indices = @transform_3, window_bounds = array<i64: 1, 64, 64>}]} {
    %c0 = arith.constant 0 : index
    %c0_0 = arith.constant 0 : index
    %c0_1 = arith.constant 0 : index
    %0 = vector.load %arg2[%c0, %c0_0, %c0_1] : memref<1x64x288xbf16, #tpu.memory_space<vmem>>, vector<1x64x288xbf16>
    %1 = vector.shape_cast %0 : vector<1x64x288xbf16> to vector<64x288xbf16>
    %c0_2 = arith.constant 0 : index
    %c0_3 = arith.constant 0 : index
    %2 = vector.load %arg3[%c0_2, %c0_3] : memref<288x64xbf16, #tpu.memory_space<vmem>>, vector<288x64xbf16>
    %cst = arith.constant dense<0.000000e+00> : vector<64x64xf32>
    %3 = tpu.matmul %1, %2, %cst {dimension_numbers = #tpu.dot_dimension_numbers<[1], [0], [0], [1], [0, 0, 1, 1], [], []>} : vector<64x288xbf16>, vector<288x64xbf16>, vector<64x64xf32> -> vector<64x64xf32>
    %c0_4 = arith.constant 0 : index
    %c0_5 = arith.constant 0 : index
    %4 = vector.load %arg4[%c0_4, %c0_5] : memref<1x64xf32, #tpu.memory_space<vmem>>, vector<1x64xf32>
    %5 = vector.broadcast %4 : vector<1x64xf32> to vector<64x64xf32>
    %6 = arith.addf %3, %5 : vector<64x64xf32>
    %cst_6 = arith.constant 0.000000e+00 : f32
    %7 = vector.broadcast %cst_6 : f32 to vector<64x64xf32>
    %8 = arith.maximumf %6, %7 : vector<64x64xf32>
    %c0_7 = arith.constant 0 : index
    %c0_8 = arith.constant 0 : index
    %c0_9 = arith.constant 0 : index
    %9 = vector.load %arg5[%c0_7, %c0_8, %c0_9] : memref<1x64x64xf32, #tpu.memory_space<vmem>>, vector<1x64x64xf32>
    %10 = vector.shape_cast %9 : vector<1x64x64xf32> to vector<64x64xf32>
    %11 = vector.shape_cast %8 : vector<64x64xf32> to vector<1x64x64xf32>
    tpu.vector_store %arg5[%c0_7, %c0_8, %c0_9], %11 {strides = array<i32>} : memref<1x64x64xf32, #tpu.memory_space<vmem>>, vector<1x64x64xf32>,
    return
  }
  func.func @transform_0(%arg0: i32, %arg1: i32) -> (i32, i32, i32) {
    %c0_i32 = arith.constant 0 : i32
    %c0_i32_0 = arith.constant 0 : i32
    return %arg0, %arg1, %c0_i32 : i32, i32, i32
  }
  func.func @transform_1(%arg0: i32, %arg1: i32) -> (i32, i32) {
    %c0_i32 = arith.constant 0 : i32
    %c0_i32_0 = arith.constant 0 : i32
    %c0_i32_1 = arith.constant 0 : i32
    return %c0_i32, %c0_i32_0 : i32, i32
  }
  func.func @transform_2(%arg0: i32, %arg1: i32) -> (i32, i32) {
    %c0_i32 = arith.constant 0 : i32
    %c0_i32_0 = arith.constant 0 : i32
    %c0_i32_1 = arith.constant 0 : i32
    return %c0_i32, %c0_i32_0 : i32, i32
  }
  func.func @transform_3(%arg0: i32, %arg1: i32) -> (i32, i32, i32) {
    %c0_i32 = arith.constant 0 : i32
    %c0_i32_0 = arith.constant 0 : i32
    return %arg0, %arg1, %c0_i32 : i32, i32, i32
  }
}

module attributes {stable_mosaic.version = 11 : i64} {
  func.func @_gemm_bias_kernel(%arg0: i32, %arg1: i32, %arg2: memref<1x64x32xbf16, #tpu.memory_space<vmem>>, %arg3: memref<32x64xbf16, #tpu.memory_space<vmem>>, %arg4: memref<1x64xf32, #tpu.memory_space<vmem>>, %arg5: memref<1x64x64xf32, #tpu.memory_space<vmem>>) attributes {dimension_semantics = [#tpu.dimension_semantics<parallel>, #tpu.dimension_semantics<parallel>], iteration_bounds = array<i64: 2, 1>, scalar_prefetch = 0 : i64, scratch_operands = 0 : i64, tpu.core_type = #tpu.core_type<tc>, window_params = [{transform_indices = @transform_0, window_bounds = array<i64: 1, 64, 32>}, {pipeline_mode = #tpu.pipeline_mode<synchronous>, transform_indices = @transform_1, window_bounds = array<i64: 32, 64>}, {pipeline_mode = #tpu.pipeline_mode<synchronous>, transform_indices = @transform_2, window_bounds = array<i64: 1, 64>}, {transform_indices = @transform_3, window_bounds = array<i64: 1, 64, 64>}]} {
    %c0 = arith.constant 0 : index
    %c0_0 = arith.constant 0 : index
    %c0_1 = arith.constant 0 : index
    %0 = vector.load %arg2[%c0, %c0_0, %c0_1] : memref<1x64x32xbf16, #tpu.memory_space<vmem>>, vector<1x64x32xbf16>
    %1 = vector.shape_cast %0 : vector<1x64x32xbf16> to vector<64x32xbf16>
    %c0_2 = arith.constant 0 : index
    %c0_3 = arith.constant 0 : index
    %2 = vector.load %arg3[%c0_2, %c0_3] : memref<32x64xbf16, #tpu.memory_space<vmem>>, vector<32x64xbf16>
    %cst = arith.constant dense<0.000000e+00> : vector<64x64xf32>
    %3 = tpu.matmul %1, %2, %cst {dimension_numbers = #tpu.dot_dimension_numbers<[1], [0], [0], [1], [0, 0, 1, 1], [], []>} : vector<64x32xbf16>, vector<32x64xbf16>, vector<64x64xf32> -> vector<64x64xf32>
    %c0_4 = arith.constant 0 : index
    %c0_5 = arith.constant 0 : index
    %4 = vector.load %arg4[%c0_4, %c0_5] : memref<1x64xf32, #tpu.memory_space<vmem>>, vector<1x64xf32>
    %5 = vector.broadcast %4 : vector<1x64xf32> to vector<64x64xf32>
    %6 = arith.addf %3, %5 : vector<64x64xf32>
    %c0_6 = arith.constant 0 : index
    %c0_7 = arith.constant 0 : index
    %c0_8 = arith.constant 0 : index
    %7 = vector.load %arg5[%c0_6, %c0_7, %c0_8] : memref<1x64x64xf32, #tpu.memory_space<vmem>>, vector<1x64x64xf32>
    %8 = vector.shape_cast %7 : vector<1x64x64xf32> to vector<64x64xf32>
    %9 = vector.shape_cast %6 : vector<64x64xf32> to vector<1x64x64xf32>
    tpu.vector_store %arg5[%c0_6, %c0_7, %c0_8], %9 {strides = array<i32>} : memref<1x64x64xf32, #tpu.memory_space<vmem>>, vector<1x64x64xf32>,
    return
  }
  func.func @transform_0(%arg0: i32, %arg1: i32) -> (i32, i32, i32) {
    %c0_i32 = arith.constant 0 : i32
    %c0_i32_0 = arith.constant 0 : i32
    return %arg0, %arg1, %c0_i32 : i32, i32, i32
  }
  func.func @transform_1(%arg0: i32, %arg1: i32) -> (i32, i32) {
    %c0_i32 = arith.constant 0 : i32
    %c0_i32_0 = arith.constant 0 : i32
    %c0_i32_1 = arith.constant 0 : i32
    return %c0_i32, %c0_i32_0 : i32, i32
  }
  func.func @transform_2(%arg0: i32, %arg1: i32) -> (i32, i32) {
    %c0_i32 = arith.constant 0 : i32
    %c0_i32_0 = arith.constant 0 : i32
    %c0_i32_1 = arith.constant 0 : i32
    return %c0_i32, %c0_i32_0 : i32, i32
  }
  func.func @transform_3(%arg0: i32, %arg1: i32) -> (i32, i32, i32) {
    %c0_i32 = arith.constant 0 : i32
    %c0_i32_0 = arith.constant 0 : i32
    return %arg0, %arg1, %c0_i32 : i32, i32, i32
  }
}

module attributes {stable_mosaic.version = 11 : i64} {
  func.func @_gemm_bias_add_relu_kernel(%arg0: i32, %arg1: i32, %arg2: memref<1x64x576xbf16, #tpu.memory_space<vmem>>, %arg3: memref<576x64xbf16, #tpu.memory_space<vmem>>, %arg4: memref<1x64xf32, #tpu.memory_space<vmem>>, %arg5: memref<1x64x64xf32, #tpu.memory_space<vmem>>, %arg6: memref<1x64x64xf32, #tpu.memory_space<vmem>>) attributes {dimension_semantics = [#tpu.dimension_semantics<parallel>, #tpu.dimension_semantics<parallel>], iteration_bounds = array<i64: 2, 1>, scalar_prefetch = 0 : i64, scratch_operands = 0 : i64, tpu.core_type = #tpu.core_type<tc>, window_params = [{transform_indices = @transform_0, window_bounds = array<i64: 1, 64, 576>}, {pipeline_mode = #tpu.pipeline_mode<synchronous>, transform_indices = @transform_1, window_bounds = array<i64: 576, 64>}, {pipeline_mode = #tpu.pipeline_mode<synchronous>, transform_indices = @transform_2, window_bounds = array<i64: 1, 64>}, {transform_indices = @transform_3, window_bounds = array<i64: 1, 64, 64>}, {transform_indices = @transform_4, window_bounds = array<i64: 1, 64, 64>}]} {
    %c0 = arith.constant 0 : index
    %c0_0 = arith.constant 0 : index
    %c0_1 = arith.constant 0 : index
    %0 = vector.load %arg2[%c0, %c0_0, %c0_1] : memref<1x64x576xbf16, #tpu.memory_space<vmem>>, vector<1x64x576xbf16>
    %1 = vector.shape_cast %0 : vector<1x64x576xbf16> to vector<64x576xbf16>
    %c0_2 = arith.constant 0 : index
    %c0_3 = arith.constant 0 : index
    %2 = vector.load %arg3[%c0_2, %c0_3] : memref<576x64xbf16, #tpu.memory_space<vmem>>, vector<576x64xbf16>
    %cst = arith.constant dense<0.000000e+00> : vector<64x64xf32>
    %3 = tpu.matmul %1, %2, %cst {dimension_numbers = #tpu.dot_dimension_numbers<[1], [0], [0], [1], [0, 0, 1, 1], [], []>} : vector<64x576xbf16>, vector<576x64xbf16>, vector<64x64xf32> -> vector<64x64xf32>
    %c0_4 = arith.constant 0 : index
    %c0_5 = arith.constant 0 : index
    %4 = vector.load %arg4[%c0_4, %c0_5] : memref<1x64xf32, #tpu.memory_space<vmem>>, vector<1x64xf32>
    %5 = vector.broadcast %4 : vector<1x64xf32> to vector<64x64xf32>
    %6 = arith.addf %3, %5 : vector<64x64xf32>
    %c0_6 = arith.constant 0 : index
    %c0_7 = arith.constant 0 : index
    %c0_8 = arith.constant 0 : index
    %7 = vector.load %arg5[%c0_6, %c0_7, %c0_8] : memref<1x64x64xf32, #tpu.memory_space<vmem>>, vector<1x64x64xf32>
    %8 = vector.shape_cast %7 : vector<1x64x64xf32> to vector<64x64xf32>
    %9 = arith.addf %6, %8 : vector<64x64xf32>
    %cst_9 = arith.constant 0.000000e+00 : f32
    %10 = vector.broadcast %cst_9 : f32 to vector<64x64xf32>
    %11 = arith.maximumf %9, %10 : vector<64x64xf32>
    %c0_10 = arith.constant 0 : index
    %c0_11 = arith.constant 0 : index
    %c0_12 = arith.constant 0 : index
    %12 = vector.load %arg6[%c0_10, %c0_11, %c0_12] : memref<1x64x64xf32, #tpu.memory_space<vmem>>, vector<1x64x64xf32>
    %13 = vector.shape_cast %12 : vector<1x64x64xf32> to vector<64x64xf32>
    %14 = vector.shape_cast %11 : vector<64x64xf32> to vector<1x64x64xf32>
    tpu.vector_store %arg6[%c0_10, %c0_11, %c0_12], %14 {strides = array<i32>} : memref<1x64x64xf32, #tpu.memory_space<vmem>>, vector<1x64x64xf32>,
    return
  }
  func.func @transform_0(%arg0: i32, %arg1: i32) -> (i32, i32, i32) {
    %c0_i32 = arith.constant 0 : i32
    %c0_i32_0 = arith.constant 0 : i32
    return %arg0, %arg1, %c0_i32 : i32, i32, i32
  }
  func.func @transform_1(%arg0: i32, %arg1: i32) -> (i32, i32) {
    %c0_i32 = arith.constant 0 : i32
    %c0_i32_0 = arith.constant 0 : i32
    %c0_i32_1 = arith.constant 0 : i32
    return %c0_i32, %c0_i32_0 : i32, i32
  }
  func.func @transform_2(%arg0: i32, %arg1: i32) -> (i32, i32) {
    %c0_i32 = arith.constant 0 : i32
    %c0_i32_0 = arith.constant 0 : i32
    %c0_i32_1 = arith.constant 0 : i32
    return %c0_i32, %c0_i32_0 : i32, i32
  }
  func.func @transform_3(%arg0: i32, %arg1: i32) -> (i32, i32, i32) {
    %c0_i32 = arith.constant 0 : i32
    %c0_i32_0 = arith.constant 0 : i32
    return %arg0, %arg1, %c0_i32 : i32, i32, i32
  }
  func.func @transform_4(%arg0: i32, %arg1: i32) -> (i32, i32, i32) {
    %c0_i32 = arith.constant 0 : i32
    %c0_i32_0 = arith.constant 0 : i32
    return %arg0, %arg1, %c0_i32 : i32, i32, i32
  }
}

</mosaic_0001>

<bundles_post_ra>
// kernel: model_forward.5
= control target key start
LH: loop header
LB: loop body
LE: loop exit
PB: predicated region body
PF: predicated region fallthrough
CT: control target
= control target key end

     0   :  { %s1160_s12 = smov 0   ;;  %s1162_s13 = smov 0   ;;  %s1400_s0 = inlined_call_operand.vmem [shape: bf16[2,256,288], index: 0, kind: input, shape index: {}]   ;;  %s1401_s1 = inlined_call_operand.vmem [shape: bf16[288,32], index: 1, kind: input, shape index: {}]   ;;  %s1402_s2 = inlined_call_operand.vmem [shape: f32[1,32], index: 2, kind: input, shape index: {}]   ;;  %s1403_s3 = inlined_call_operand.vmem [shape: f32[2,256,32], index: 3, kind: output, shape index: {}]  }
   0x1   :  { %s1164_s14 = smov 0   ;;  %s1166_s15 = smov 0  }
   0x2   :  { %s1168_s16 = smov 0  }
   0x3 LB: > { %s22_s17 = sadd.s32 1, %s1130_s14  ;;  %s25_s18 = sadd.s32 1, %s1134_s15  ;;  %s1138_s16 = sphi %s1168_s16, %s13_s16   ;;  %s1134_s15 = sphi %s1166_s15, %s1407_s15   ;;  %s1130_s14 = sphi %s1164_s14, %s1406_s14   ;;  %s1126_s13 = sphi %s1162_s13, %s1405_s13   ;;  %s1122_s12 = sphi %s1160_s12, %s1404_s12  }
   0x4   : > { %p23_p0 = scmp.ge.s32.totalorder %s22_s17, 2  ;;  %p815_p1 = scmp.ge.s32.totalorder %s1138_s16, 1 }
   0x5   : > { %p159_p2 = scmp.lt.s32.totalorder %s1138_s16, 5 }
   0x6   : > { %s1409_s17 = smov (%p23_p0, %s22_s17), 0  ;;  %s1411_s18 = smov (!%p23_p0, %s25_s18), %s1134_s15 }
   0x7   : > { %p160_p3 = pnand %p815_p1, %p159_p2  ;;  %p27_p4 = scmp.ge.s32.totalorder %s1411_s18, 2 }
   0x8   : > { %s816_s25 = sshll.u32 (!%p160_p3), %s1122_s12, 4  ;;  %p193_p5 = scmp.lt.s32.totalorder (!%p160_p3), %s1126_s13, 1 }
   0x9   : > { %s1413_s18 = smov (%p27_p4, %s1411_s18), 0  ;;  %163 = sbr.rel (%p160_p3) target bundleno = 281 (0x119), region = 32 }
   0xa   : > { %p195_p6 = scmp.lt.s32.totalorder (!%p160_p3), %s816_s25, 31 }
   0xe   : > { %v1030_v0 = vld [vmem:[%s1401_s1 + $0x38] sm:$0xff]  ;;  %v1040_v2 = vld [vmem:[%s1401_s1 + $0x88] sm:$0xff]  ;;  %v1029_v3 = vld [vmem:[%s1401_s1 + $0x30] sm:$0xff]  ;;  %s1415_s13 = smov (!%p193_p5, %s1126_s13), 1  ;;  %s1417_s25 = smov (!%p195_p6, %s816_s25), 31  ;;  %vm514_vm0 = vcmask 261120  }
   0xf   : > { %v1198_v1 = vld [vmem:[%s1401_s1 + $0x78] sm:$0xff]  ;;  %539 = vmatpush.bf16.msra.mxu0 %v1030_v0  ;;  %v1211_v4 = vld [vmem:[%s1401_s1 + $0x70] sm:$0xff]  ;;  %1041 = vmatpush.bf16.msra.mxu3 %v1030_v0  ;;  %v1039_v5 = vld [vmem:[%s1401_s1 + $0x80] sm:$0xff]  ;;  %s1058_s5 = smul.u32 96, %s1415_s13  ;;  %s819_s23 = sshll.u32 %s1415_s13, 5 }
  0x10   : > { %588 = vmatpush.bf16.msra.mxu1 %v1198_v1  ;;  %643 = vmatpush.bf16.msra.mxu2 %v1040_v2  ;;  %s1057_s6 = smul.u32 3, %s1417_s25  ;;  %v1028_v6 = vld [vmem:[%s1401_s1 + $0x28] sm:$0xff]  ;;  %v1027_v8 = vld [vmem:[%s1401_s1 + $0x20] sm:$0xff]  ;;  %v1026_v13 = vld [vmem:[%s1401_s1 + $0x18] sm:$0xff]  ;;  %s1279_s24 = sadd.s32 %s819_s23, %s1417_s25 }
  0x11   : > { %v1036_v7 = vld [vmem:[%s1401_s1 + $0x68] sm:$0xff]  ;;  %v1035_v11 = vld [vmem:[%s1401_s1 + $0x60] sm:$0xff]  ;;  %v1034_v14 = vld [vmem:[%s1401_s1 + $0x58] sm:$0xff]  ;;  %s820_s26 = sshll.u32 %s1279_s24, 3 }
  0x12   : > { %s199_s11 = sadd.s32 %s1058_s5, %s1057_s6  ;;  %v1025_v15 = vld [vmem:[%s1401_s1 + $0x10] sm:$0xff]  ;;  %v1024_v17 = vld [vmem:[%s1401_s1 + $0x8] sm:$0xff]  ;;  %v1023_v22 = vld [vmem:[%s1401_s1] sm:$0xff]  ;;  %s1336_s28 = scalar_lea.vmem %s1403_s3, %s820_s26 }
  0x13   : > { %540 = vmatpush.bf16.msra.mxu0 %v1029_v3  ;;  %1042 = vmatpush.bf16.msra.mxu3 %v1029_v3  ;;  %s817_s12 = sshll.u32 %s199_s11, 2  ;;  %v1033_v16 = vld [vmem:[%s1401_s1 + $0x50] sm:$0xff]  ;;  %v1032_v18 = vld [vmem:[%s1401_s1 + $0x48] sm:$0xff]  ;;  %v1031_v23 = vld [vmem:[%s1401_s1 + $0x40] sm:$0xff] }
  0x14   : > { %589 = vmatpush.bf16.msra.mxu1 %v1211_v4  ;;  %644 = vmatpush.bf16.msra.mxu2 %v1039_v5  ;;  %s1232_s21 = scalar_lea.vmem %s1400_s0, %s817_s12 }
  0x15   : > { %v831_v9 = vld [vmem:[%s1232_s21 + $0x8] sm:$0xf]  ;;  %v1001_v10 = vld [vmem:[%s1232_s21 + $0x10] sm:$0xf0]  ;;  %v843_v19 = vld [vmem:[%s1232_s21 + $0x20] sm:$0xf] }
  0x16   : > { %v832_v12 = vor.u32 %v1001_v10, %v831_v9  ;;  %v1004_v20 = vld [vmem:[%s1232_s21 + $0x28] sm:$0xf0]  ;;  %v823_v24 = vld [vmem:[%s1232_s21] sm:$0xf]  ;;  %v999_v26 = vld [vmem:[%s1232_s21 + $0x4] sm:$0xf] }
  0x17   : > { %541 = vmatpush.bf16.msra.mxu0 %v1028_v6  ;;  %1043 = vmatpush.bf16.msra.mxu3 %v1028_v6  ;;  %v844_v21 = vor.u32 %v1004_v20, %v843_v19  ;;  %v1000_v25 = vld [vmem:[%s1232_s21 + $0x8] sm:$0xf0]  ;;  %v825_v27 = vld [vmem:[%s1232_s21 + $0xc] sm:$0xf0]  ;;  %v1018_v29 = vld [vmem:[%s1232_s21 + $0x98] sm:$0xf0] }
  0x18   : > { %590 = vmatpush.bf16.msra.mxu1 %v1036_v7  ;;  %989 = vmatmul.msk.bf16.vlgmr.msra.gmra.mxu2 %vm514_vm0, %v832_v12  ;;  %v895_v28 = vld [vmem:[%s1232_s21 + $0x90] sm:$0xf]  ;;  %v824_v30 = vor.u32 %v1000_v25, %v823_v24  ;;  %v828_v31 = vor.u32 %v999_v26, %v825_v27  ;;  %v855_v33 = vld [vmem:[%s1232_s21 + $0x38] sm:$0xf]  ;;  %v1007_v34 = vld [vmem:[%s1232_s21 + $0x40] sm:$0xf0] }
  0x19   : > { %v896_v32 = vor.u32 %v1018_v29, %v895_v28  ;;  %v856_v35 = vor.u32 %v1007_v34, %v855_v33  ;;  %v835_v36 = vld [vmem:[%s1232_s21 + $0x18] sm:$0xf]  ;;  %v1003_v37 = vld [vmem:[%s1232_s21 + $0x20] sm:$0xf0]  ;;  %v1002_v38 = vld [vmem:[%s1232_s21 + $0x1c] sm:$0xf] }
  0x1a   : > { %v837_v39 = vld [vmem:[%s1232_s21 + $0x24] sm:$0xf0]  ;;  %v1021_v41 = vld [vmem:[%s1232_s21 + $0xb0] sm:$0xf0]  ;;  %v836_v42 = vor.u32 %v1003_v37, %v835_v36  ;;  %v867_v45 = vld [vmem:[%s1232_s21 + $0x50] sm:$0xf] }
  0x1b   : > { %542 = vmatpush.bf16.msra.mxu0 %v1027_v8  ;;  %1044 = vmatpush.bf16.msra.mxu3 %v1027_v8  ;;  %v907_v40 = vld [vmem:[%s1232_s21 + $0xa8] sm:$0xf]  ;;  %v840_v43 = vor.u32 %v1002_v38, %v837_v39  ;;  %v1010_v46 = vld [vmem:[%s1232_s21 + $0x58] sm:$0xf0]  ;;  %v847_v48 = vld [vmem:[%s1232_s21 + $0x30] sm:$0xf] }
  0x1c   : > { %591 = vmatpush.bf16.msra.mxu1 %v1035_v11  ;;  %v908_v44 = vor.u32 %v1021_v41, %v907_v40  ;;  %v868_v47 = vor.u32 %v1010_v46, %v867_v45  ;;  %v1006_v49 = vld [vmem:[%s1232_s21 + $0x38] sm:$0xf0]  ;;  %v1005_v50 = vld [vmem:[%s1232_s21 + $0x34] sm:$0xf]  ;;  %v849_v51 = vld [vmem:[%s1232_s21 + $0x3c] sm:$0xf0] }
  0x1d   : > { %v1017_v52 = vld [vmem:[%s1232_s21 + $0x94] sm:$0xf]  ;;  %v897_v53 = vld [vmem:[%s1232_s21 + $0x9c] sm:$0xf0]  ;;  %v848_v54 = vor.u32 %v1006_v49, %v847_v48  ;;  %v852_v55 = vor.u32 %v1005_v50, %v849_v51  ;;  %v879_v57 = vld [vmem:[%s1232_s21 + $0x68] sm:$0xf] }
  0x1e   : > { %v900_v56 = vor.u32 %v1017_v52, %v897_v53  ;;  %v1013_v58 = vld [vmem:[%s1232_s21 + $0x70] sm:$0xf0]  ;;  %v859_v60 = vld [vmem:[%s1232_s21 + $0x48] sm:$0xf]  ;;  %v1008_v62 = vld [vmem:[%s1232_s21 + $0x4c] sm:$0xf] }
  0x1f   : > { %543 = vmatpush.bf16.msra.mxu0 %v1026_v13  ;;  %1045 = vmatpush.bf16.msra.mxu3 %v1026_v13  ;;  %v880_v59 = vor.u32 %v1013_v58, %v879_v57  ;;  %v1009_v61 = vld [vmem:[%s1232_s21 + $0x50] sm:$0xf0]  ;;  %v861_v63 = vld [vmem:[%s1232_s21 + $0x54] sm:$0xf0]  ;;  %v1020_v0 = vld [vmem:[%s1232_s21 + $0xac] sm:$0xf] }
  0x20   : > { %592 = vmatpush.bf16.msra.mxu1 %v1034_v14  ;;  %v860_v2 = vor.u32 %v1009_v61, %v859_v60  ;;  %v864_v3 = vor.u32 %v1008_v62, %v861_v63  ;;  %v891_v5 = vld [vmem:[%s1232_s21 + $0x80] sm:$0xf]  ;;  %v1016_v6 = vld [vmem:[%s1232_s21 + $0x88] sm:$0xf0]  ;;  %v1011_v10 = vld [vmem:[%s1232_s21 + $0x64] sm:$0xf] }
  0x21   : > { %v871_v8 = vld [vmem:[%s1232_s21 + $0x60] sm:$0xf]  ;;  %v1012_v9 = vld [vmem:[%s1232_s21 + $0x68] sm:$0xf0]  ;;  %v1014_v19 = vld [vmem:[%s1232_s21 + $0x7c] sm:$0xf] }
  0x22   : > { %v872_v12 = vor.u32 %v1012_v9, %v871_v8  ;;  %v885_v20 = vld [vmem:[%s1232_s21 + $0x84] sm:$0xf0]  ;;  %v1022_v24 = vld [vmem:[%s1232_s21 + $0xb8] sm:$0xf0]  ;;  %v1329_v28 = vld [vmem:[%s1402_s2] ss:$0 sm:$0xff] }
  0x23   : > { %544 = vmatpush.bf16.msra.mxu0 %v1025_v15  ;;  %1046 = vmatpush.bf16.msra.mxu3 %v1025_v15  ;;  %v1019_v15 = vld [vmem:[%s1232_s21 + $0xa0] sm:$0xf0] }
  0x24   : > { %593 = vmatpush.bf16.msra.mxu1 %v1033_v16 }
  0x27   : > { %545 = vmatpush.bf16.msra.mxu0 %v1024_v17  ;;  %1047 = vmatpush.bf16.msra.mxu3 %v1024_v17  ;;  %v883_v17 = vld [vmem:[%s1232_s21 + $0x78] sm:$0xf] }
  0x28   : > { %594 = vmatpush.bf16.msra.mxu1 %v1032_v18  ;;  %990 = vmatmul.msk.bf16.gmra.mxu2 %vm514_vm0, %v844_v21 }
  0x2b   : > { %546 = vmatpush.bf16.msra.mxu0 %v1023_v22  ;;  %1048 = vmatpush.bf16.msra.mxu3 %v1023_v22  ;;  %v888_v22 = vor.u32 %v1014_v19, %v885_v20 }
  0x2c   : > { %595 = vmatpush.bf16.msra.mxu1 %v1031_v23 }
  0x2e   : > { %547 = vmatmul.bf16.vlgmr.msra.gmra.mxu0 %v824_v30  ;;  %577 = vmatmul.bf16.vlgmr.msra.gmra.mxu3 %v896_v32 }
  0x2f   : > { %1049 = vmatpush.bf16.msrb.mxu3 %v1198_v1  ;;  %596 = vmatmul.bf16.vlgmr.msra.gmra.mxu1 %v828_v31  ;;  %v909_v1 = vld [vmem:[%s1232_s21 + $0xb4] sm:$0xf0] }
  0x33   : > { %1050 = vmatpush.bf16.msrb.mxu3 %v1211_v4  ;;  %v912_v4 = vor.u32 %v1020_v0, %v909_v1 }
  0x37   : > { %1051 = vmatpush.bf16.msrb.mxu3 %v1036_v7  ;;  %v892_v7 = vor.u32 %v1016_v6, %v891_v5 }
  0x38   : > { %991 = vmatmul.msk.bf16.gmra.mxu2 %vm514_vm0, %v856_v35 }
  0x3b   : > { %1052 = vmatpush.bf16.msrb.mxu3 %v1035_v11  ;;  %v873_v11 = vld [vmem:[%s1232_s21 + $0x6c] sm:$0xf0] }
  0x3c   : > { %v876_v13 = vor.u32 %v1011_v10, %v873_v11 }
  0x3e   : > { %552 = vmatmul.bf16.gmra.mxu0 %v836_v42  ;;  %582 = vmatmul.bf16.gmra.mxu3 %v908_v44 }
  0x3f   : > { %1053 = vmatpush.bf16.msrb.mxu3 %v1034_v14  ;;  %601 = vmatmul.bf16.gmra.mxu1 %v840_v43  ;;  %v903_v14 = vld [vmem:[%s1232_s21 + $0x98] sm:$0xf] }
  0x43   : > { %1054 = vmatpush.bf16.msrb.mxu3 %v1033_v16  ;;  %v904_v16 = vor.u32 %v1019_v15, %v903_v14 }
  0x47   : > { %1055 = vmatpush.bf16.msrb.mxu3 %v1032_v18  ;;  %v1015_v18 = vld [vmem:[%s1232_s21 + $0x80] sm:$0xf0] }
  0x48   : > { %992 = vmatmul.msk.bf16.gmra.mxu2 %vm514_vm0, %v868_v47  ;;  %v884_v21 = vor.u32 %v1015_v18, %v883_v17 }
  0x4b   : > { %1056 = vmatpush.bf16.msrb.mxu3 %v1031_v23  ;;  %v915_v23 = vld [vmem:[%s1232_s21 + $0xb0] sm:$0xf] }
  0x4c   : > { %v916_v25 = vor.u32 %v1022_v24, %v915_v23 }
  0x4e   : > { %557 = vmatmul.bf16.gmra.mxu0 %v848_v54  ;;  %626 = vmatmul.bf16.vlgmr.msrb.gmra.mxu3 %v900_v56 }
  0x4f   : > { %606 = vmatmul.bf16.gmra.mxu1 %v852_v55 }
  0x58   : > { %993 = vmatmul.msk.bf16.gmra.mxu2 %vm514_vm0, %v880_v59 }
  0x5e   : > { %562 = vmatmul.bf16.gmra.mxu0 %v860_v2  ;;  %631 = vmatmul.bf16.gmra.mxu3 %v912_v4 }
  0x5f   : > { %611 = vmatmul.bf16.gmra.mxu1 %v864_v3 }
  0x68   : > { %994 = vmatmul.msk.bf16.gmra.mxu2 %vm514_vm0, %v892_v7 }
  0x6e   : > { %567 = vmatmul.bf16.gmra.mxu0 %v872_v12 }
  0x6f   : > { %616 = vmatmul.bf16.gmra.mxu1 %v876_v13 }
  0x78   : > { %995 = vmatmul.msk.bf16.gmra.mxu2 %vm514_vm0, %v904_v16 }
  0x7e   : > { %572 = vmatmul.bf16.gmra.mxu0 %v884_v21 }
  0x7f   : > { %621 = vmatmul.bf16.gmra.mxu1 %v888_v22 }
  0x88   : > { %996 = vmatmul.msk.bf16.gmra.mxu2 %vm514_vm0, %v916_v25 }
  0x9b   : > { %v646_v26 = vpop.f32.mrf.mxu2 }
  0xa3   : > { %v648_v27 = vpop.f32.mrf.mxu2 }
  0xab   : > { %v548_v29 = vpop.f32.mrf.mxu0  ;;  %v651_v32 = vpop.f32.mrf.mxu2 }
  0xac   : > { %v597_v30 = vpop.f32.mrf.mxu1  ;;  %v549_v31 = vadd.f32 %v1329_v28, %v548_v29 }
  0xae   : > { %v598_v33 = vadd.f32 %v597_v30, %v549_v31 }
  0xb0   : > { %v647_v34 = vadd.f32 %v646_v26, %v598_v33 }
  0xb1   : > { %v578_v56 = vpop.f32.mrf.mxu3 }
  0xb2   : > { %v686_v35 = vmax.f32 %v647_v34, 0.0 }
  0xb3   : > { %v550_v36 = vpop.f32.mrf.mxu0  ;;  %v653_v39 = vpop.f32.mrf.mxu2 }
  0xb4   : > { %v599_v37 = vpop.f32.mrf.mxu1  ;;  %702 = vst.msk [vmem:[%s1336_s28] sm:$0xff] %vm514_vm0, %v686_v35  ;;  %v551_v38 = vadd.f32 %v1329_v28, %v550_v36 }
  0xb6   : > { %v600_v40 = vadd.f32 %v599_v37, %v551_v38 }
  0xb8   : > { %v649_v41 = vadd.f32 %v648_v27, %v600_v40 }
  0xb9   : > { %v580_v3 = vpop.f32.mrf.mxu3 }
  0xba   : > { %v687_v42 = vmax.f32 %v649_v41, 0.0 }
  0xbb   : > { %v553_v43 = vpop.f32.mrf.mxu0  ;;  %v656_v46 = vpop.f32.mrf.mxu2 }
  0xbc   : > { %v602_v44 = vpop.f32.mrf.mxu1  ;;  %703 = vst.msk [vmem:[%s1336_s28 + $0x8] sm:$0xff] %vm514_vm0, %v687_v42  ;;  %v554_v45 = vadd.f32 %v1329_v28, %v553_v43 }
  0xbe   : > { %v603_v47 = vadd.f32 %v602_v44, %v554_v45 }
  0xc0   : > { %v652_v48 = vadd.f32 %v651_v32, %v603_v47 }
  0xc1   : > { %v583_v13 = vpop.f32.mrf.mxu3 }
  0xc2   : > { %v688_v49 = vmax.f32 %v652_v48, 0.0 }
  0xc3   : > { %v555_v50 = vpop.f32.mrf.mxu0  ;;  %v658_v53 = vpop.f32.mrf.mxu2 }
  0xc4   : > { %v604_v51 = vpop.f32.mrf.mxu1  ;;  %704 = vst.msk [vmem:[%s1336_s28 + $0x10] sm:$0xff] %vm514_vm0, %v688_v49  ;;  %v556_v52 = vadd.f32 %v1329_v28, %v555_v50  ;;  %v581_v50 = vadd.f32 %v1329_v28, %v580_v3 }
  0xc6   : > { %v605_v54 = vadd.f32 %v604_v51, %v556_v52 }
  0xc8   : > { %v654_v55 = vadd.f32 %v653_v39, %v605_v54  ;;  %v579_v39 = vadd.f32 %v1329_v28, %v578_v56 }
  0xc9   : > { %v585_v22 = vpop.f32.mrf.mxu3 }
  0xca   : > { %v689_v57 = vmax.f32 %v654_v55, 0.0 }
  0xcb   : > { %v558_v58 = vpop.f32.mrf.mxu0  ;;  %v661_v61 = vpop.f32.mrf.mxu2 }
  0xcc   : > { %v607_v59 = vpop.f32.mrf.mxu1  ;;  %705 = vst.msk [vmem:[%s1336_s28 + $0x18] sm:$0xff] %vm514_vm0, %v689_v57  ;;  %v559_v60 = vadd.f32 %v1329_v28, %v558_v58 }
  0xce   : > { %v608_v62 = vadd.f32 %v607_v59, %v559_v60 }
  0xd0   : > { %v657_v63 = vadd.f32 %v656_v46, %v608_v62  ;;  %v584_v62 = vadd.f32 %v1329_v28, %v583_v13 }
  0xd1   : > { %v627_v32 = vpop.f32.mrf.mxu3 }
  0xd2   : > { %v690_v0 = vmax.f32 %v657_v63, 0.0  ;;  %v628_v44 = vadd.f32 %v627_v32, %v579_v39 }
  0xd3   : > { %v560_v1 = vpop.f32.mrf.mxu0  ;;  %v663_v5 = vpop.f32.mrf.mxu2 }
  0xd4   : > { %v609_v2 = vpop.f32.mrf.mxu1  ;;  %706 = vst.msk [vmem:[%s1336_s28 + $0x20] sm:$0xff] %vm514_vm0, %v690_v0  ;;  %v561_v4 = vadd.f32 %v1329_v28, %v560_v1 }
  0xd6   : > { %v610_v6 = vadd.f32 %v609_v2, %v561_v4 }
  0xd8   : > { %v659_v7 = vadd.f32 %v658_v53, %v610_v6 }
  0xd9   : > { %v629_v46 = vpop.f32.mrf.mxu3 }
  0xda   : > { %v691_v8 = vmax.f32 %v659_v7, 0.0  ;;  %v630_v56 = vadd.f32 %v629_v46, %v581_v50 }
  0xdb   : > { %v563_v9 = vpop.f32.mrf.mxu0  ;;  %v666_v12 = vpop.f32.mrf.mxu2 }
  0xdc   : > { %v612_v10 = vpop.f32.mrf.mxu1  ;;  %707 = vst.msk [vmem:[%s1336_s28 + $0x28] sm:$0xff] %vm514_vm0, %v691_v8  ;;  %v564_v11 = vadd.f32 %v1329_v28, %v563_v9 }
  0xde   : > { %v613_v14 = vadd.f32 %v612_v10, %v564_v11 }
  0xe0   : > { %v662_v15 = vadd.f32 %v661_v61, %v613_v14 }
  0xe1   : > { %v632_v61 = vpop.f32.mrf.mxu3 }
  0xe2   : > { %v692_v16 = vmax.f32 %v662_v15, 0.0  ;;  %v633_v2 = vadd.f32 %v632_v61, %v584_v62 }
  0xe3   : > { %v565_v17 = vpop.f32.mrf.mxu0  ;;  %v668_v20 = vpop.f32.mrf.mxu2 }
  0xe4   : > { %v614_v18 = vpop.f32.mrf.mxu1  ;;  %708 = vst.msk [vmem:[%s1336_s28 + $0x30] sm:$0xff] %vm514_vm0, %v692_v16  ;;  %v566_v19 = vadd.f32 %v1329_v28, %v565_v17 }
  0xe6   : > { %v615_v21 = vadd.f32 %v614_v18, %v566_v19 }
  0xe8   : > { %v664_v23 = vadd.f32 %v663_v5, %v615_v21  ;;  %v586_v5 = vadd.f32 %v1329_v28, %v585_v22 }
  0xe9   : > { %v634_v7 = vpop.f32.mrf.mxu3 }
  0xea   : > { %v693_v24 = vmax.f32 %v664_v23, 0.0  ;;  %v635_v8 = vadd.f32 %v634_v7, %v586_v5 }
  0xeb   : > { %v568_v25 = vpop.f32.mrf.mxu0  ;;  %v671_v29 = vpop.f32.mrf.mxu2 }
  0xec   : > { %v617_v26 = vpop.f32.mrf.mxu1  ;;  %709 = vst.msk [vmem:[%s1336_s28 + $0x38] sm:$0xff] %vm514_vm0, %v693_v24  ;;  %v569_v27 = vadd.f32 %v1329_v28, %v568_v25 }
  0xee   : > { %v618_v30 = vadd.f32 %v617_v26, %v569_v27 }
  0xf0   : > { %v667_v31 = vadd.f32 %v666_v12, %v618_v30 }
  0xf2   : > { %v694_v33 = vmax.f32 %v667_v31, 0.0 }
  0xf3   : > { %v570_v34 = vpop.f32.mrf.mxu0  ;;  %v673_v37 = vpop.f32.mrf.mxu2 }
  0xf4   : > { %v619_v35 = vpop.f32.mrf.mxu1  ;;  %710 = vst.msk [vmem:[%s1336_s28 + $0x40] sm:$0xff] %vm514_vm0, %v694_v33  ;;  %v571_v36 = vadd.f32 %v1329_v28, %v570_v34 }
  0xf6   : > { %v620_v38 = vadd.f32 %v619_v35, %v571_v36 }
  0xf8   : > { %v669_v40 = vadd.f32 %v668_v20, %v620_v38 }
  0xfa   : > { %v695_v41 = vmax.f32 %v669_v40, 0.0 }
  0xfb   : > { %v573_v42 = vpop.f32.mrf.mxu0  ;;  %v676_v47 = vpop.f32.mrf.mxu2 }
  0xfc   : > { %v622_v43 = vpop.f32.mrf.mxu1  ;;  %711 = vst.msk [vmem:[%s1336_s28 + $0x48] sm:$0xff] %vm514_vm0, %v695_v41  ;;  %v574_v45 = vadd.f32 %v1329_v28, %v573_v42  ;;  %v677_v48 = vadd.f32 %v676_v47, %v628_v44 }
  0xfe   : > { %v623_v49 = vadd.f32 %v622_v43, %v574_v45  ;;  %v698_v51 = vmax.f32 %v677_v48, 0.0 }
 0x100   : > { %v672_v52 = vadd.f32 %v671_v29, %v623_v49  ;;  %714 = vst.msk [vmem:[%s1336_s28 + $0x60] sm:$0xff] %vm514_vm0, %v698_v51 }
 0x102   : > { %v696_v53 = vmax.f32 %v672_v52, 0.0 }
 0x103   : > { %v575_v54 = vpop.f32.mrf.mxu0  ;;  %v678_v58 = vpop.f32.mrf.mxu2 }
 0x104   : > { %v624_v55 = vpop.f32.mrf.mxu1  ;;  %712 = vst.msk [vmem:[%s1336_s28 + $0x50] sm:$0xff] %vm514_vm0, %v696_v53  ;;  %v576_v57 = vadd.f32 %v1329_v28, %v575_v54  ;;  %v679_v59 = vadd.f32 %v678_v58, %v630_v56 }
 0x106   : > { %v625_v60 = vadd.f32 %v624_v55, %v576_v57  ;;  %v699_v63 = vmax.f32 %v679_v59, 0.0 }
 0x108   : > { %v674_v0 = vadd.f32 %v673_v37, %v625_v60  ;;  %715 = vst.msk [vmem:[%s1336_s28 + $0x68] sm:$0xff] %vm514_vm0, %v699_v63 }
 0x10a   : > { %v697_v1 = vmax.f32 %v674_v0, 0.0 }
 0x10b   : > { %v681_v3 = vpop.f32.mrf.mxu2 }
 0x10c   : > { %713 = vst.msk [vmem:[%s1336_s28 + $0x58] sm:$0xff] %vm514_vm0, %v697_v1  ;;  %v682_v4 = vadd.f32 %v681_v3, %v633_v2 }
 0x10e   : > { %v700_v6 = vmax.f32 %v682_v4, 0.0 }
 0x110   : > { %716 = vst.msk [vmem:[%s1336_s28 + $0x70] sm:$0xff] %vm514_vm0, %v700_v6 }
 0x113   : > { %v683_v9 = vpop.f32.mrf.mxu2 }
 0x114   : > { %v684_v10 = vadd.f32 %v683_v9, %v635_v8 }
 0x116   : > { %v701_v11 = vmax.f32 %v684_v10, 0.0 }
 0x118   : > { %717 = vst.msk [vmem:[%s1336_s28 + $0x78] sm:$0xff] %vm514_vm0, %v701_v11 }
 0x119 PF: > { %s13_s16 = sadd.s32 1, %s1138_s16   ;;  %s1404_s12 = smov %s1130_s14 }
 0x11a   : > { %p10_p7 = scmp.ge.s32.totalorder %s13_s16, 6   ;;  %s1405_s13 = smov %s1134_s15 }
 0x11b   : > { %s1406_s14 = smov %s1409_s17  ;;  %s1407_s15 = smov %s1413_s18 }
 0x11c   :  { %12 = sbr.rel (!%p10_p7) target bundleno = 3 (0x3), region = 62 }

// kernel: model_forward.6
= control target key start
LH: loop header
LB: loop body
LE: loop exit
PB: predicated region body
PF: predicated region fallthrough
CT: control target
= control target key end

     0   :  { %s1281_s15 = smov 0   ;;  %s1283_s16 = smov 0   ;;  %s1554_s0 = inlined_call_operand.vmem [shape: bf16[2,256,288], index: 0, kind: input, shape index: {}]   ;;  %s1555_s1 = inlined_call_operand.vmem [shape: bf16[288,32], index: 1, kind: input, shape index: {}]   ;;  %s1556_s2 = inlined_call_operand.vmem [shape: f32[1,32], index: 2, kind: input, shape index: {}]   ;;  %s1557_s3 = inlined_call_operand.vmem [shape: f32[2,256,32], index: 3, kind: input, shape index: {}]   ;;  %s1558_s4 = inlined_call_operand.vmem [shape: f32[2,256,32], index: 4, kind: output, shape index: {}]  }
   0x1   :  { %s1285_s17 = smov 0   ;;  %s1287_s18 = smov 0  }
   0x2   :  { %s1289_s19 = smov 0  }
   0x3 LB: > { %s23_s20 = sadd.s32 1, %s1246_s17  ;;  %s26_s21 = sadd.s32 1, %s1250_s18  ;;  %s1254_s19 = sphi %s1289_s19, %s14_s19   ;;  %s1250_s18 = sphi %s1287_s18, %s1562_s18   ;;  %s1246_s17 = sphi %s1285_s17, %s1561_s17   ;;  %s1242_s16 = sphi %s1283_s16, %s1560_s16   ;;  %s1238_s15 = sphi %s1281_s15, %s1559_s15  }
   0x4   : > { %p24_p0 = scmp.ge.s32.totalorder %s23_s20, 2  ;;  %p928_p1 = scmp.ge.s32.totalorder %s1254_s19, 1 }
   0x5   : > { %p201_p2 = scmp.lt.s32.totalorder %s1254_s19, 5 }
   0x6   : > { %s1564_s20 = smov (%p24_p0, %s23_s20), 0  ;;  %s1566_s21 = smov (!%p24_p0, %s26_s21), %s1250_s18 }
   0x7   : > { %p202_p3 = pnand %p928_p1, %p201_p2  ;;  %p28_p4 = scmp.ge.s32.totalorder %s1566_s21, 2 }
   0x8   : > { %s929_s28 = sshll.u32 (!%p202_p3), %s1238_s15, 4  ;;  %p246_p5 = scmp.lt.s32.totalorder (!%p202_p3), %s1242_s16, 1 }
   0x9   : > { %s1568_s21 = smov (%p28_p4, %s1566_s21), 0  ;;  %205 = sbr.rel (%p202_p3) target bundleno = 283 (0x11b), region = 36 }
   0xa   : > { %p248_p6 = scmp.lt.s32.totalorder (!%p202_p3), %s929_s28, 31 }
   0xe   : > { %v1146_v0 = vld [vmem:[%s1555_s1 + $0x38] sm:$0xff]  ;;  %v1156_v2 = vld [vmem:[%s1555_s1 + $0x88] sm:$0xff]  ;;  %v1145_v3 = vld [vmem:[%s1555_s1 + $0x30] sm:$0xff]  ;;  %s1570_s16 = smov (!%p246_p5, %s1242_s16), 1  ;;  %s1572_s28 = smov (!%p248_p6, %s929_s28), 31  ;;  %vm577_vm0 = vcmask 261120  }
   0xf   : > { %v1319_v1 = vld [vmem:[%s1555_s1 + $0x78] sm:$0xff]  ;;  %602 = vmatpush.bf16.msra.mxu0 %v1146_v0  ;;  %v1332_v4 = vld [vmem:[%s1555_s1 + $0x70] sm:$0xff]  ;;  %1157 = vmatpush.bf16.msra.mxu3 %v1146_v0  ;;  %v1155_v5 = vld [vmem:[%s1555_s1 + $0x80] sm:$0xff]  ;;  %s1174_s9 = smul.u32 96, %s1570_s16  ;;  %s932_s29 = sshll.u32 %s1570_s16, 5 }
  0x10   : > { %651 = vmatpush.bf16.msra.mxu1 %v1319_v1  ;;  %706 = vmatpush.bf16.msra.mxu2 %v1156_v2  ;;  %s1173_s10 = smul.u32 3, %s1572_s28  ;;  %v1144_v6 = vld [vmem:[%s1555_s1 + $0x28] sm:$0xff]  ;;  %v1143_v8 = vld [vmem:[%s1555_s1 + $0x20] sm:$0xff]  ;;  %v1142_v13 = vld [vmem:[%s1555_s1 + $0x18] sm:$0xff]  ;;  %s1400_s30 = sadd.s32 %s932_s29, %s1572_s28 }
  0x11   : > { %v1152_v7 = vld [vmem:[%s1555_s1 + $0x68] sm:$0xff]  ;;  %v1151_v11 = vld [vmem:[%s1555_s1 + $0x60] sm:$0xff]  ;;  %v1150_v14 = vld [vmem:[%s1555_s1 + $0x58] sm:$0xff]  ;;  %s933_s5 = sshll.u32 %s1400_s30, 3 }
  0x12   : > { %s252_s15 = sadd.s32 %s1174_s9, %s1173_s10  ;;  %v1141_v15 = vld [vmem:[%s1555_s1 + $0x10] sm:$0xff]  ;;  %v1140_v17 = vld [vmem:[%s1555_s1 + $0x8] sm:$0xff]  ;;  %v1139_v22 = vld [vmem:[%s1555_s1] sm:$0xff]  ;;  %s1457_s8 = scalar_lea.vmem %s1557_s3, %s933_s5 }
  0x13   : > { %603 = vmatpush.bf16.msra.mxu0 %v1145_v3  ;;  %1158 = vmatpush.bf16.msra.mxu3 %v1145_v3  ;;  %s930_s22 = sshll.u32 %s252_s15, 2  ;;  %v1149_v16 = vld [vmem:[%s1555_s1 + $0x50] sm:$0xff]  ;;  %v1148_v18 = vld [vmem:[%s1555_s1 + $0x48] sm:$0xff]  ;;  %v1147_v23 = vld [vmem:[%s1555_s1 + $0x40] sm:$0xff]  ;;  %s1463_s10 = scalar_lea.vmem %s1558_s4, %s933_s5 }
  0x14   : > { %652 = vmatpush.bf16.msra.mxu1 %v1332_v4  ;;  %707 = vmatpush.bf16.msra.mxu2 %v1155_v5  ;;  %s1353_s25 = scalar_lea.vmem %s1554_s0, %s930_s22 }
  0x15   : > { %v947_v9 = vld [vmem:[%s1353_s25 + $0x8] sm:$0xf]  ;;  %v1117_v10 = vld [vmem:[%s1353_s25 + $0x10] sm:$0xf0]  ;;  %v959_v19 = vld [vmem:[%s1353_s25 + $0x20] sm:$0xf] }
  0x16   : > { %v948_v12 = vor.u32 %v1117_v10, %v947_v9  ;;  %v1120_v20 = vld [vmem:[%s1353_s25 + $0x28] sm:$0xf0]  ;;  %v939_v24 = vld [vmem:[%s1353_s25] sm:$0xf]  ;;  %v1115_v26 = vld [vmem:[%s1353_s25 + $0x4] sm:$0xf] }
  0x17   : > { %604 = vmatpush.bf16.msra.mxu0 %v1144_v6  ;;  %1159 = vmatpush.bf16.msra.mxu3 %v1144_v6  ;;  %v960_v21 = vor.u32 %v1120_v20, %v959_v19  ;;  %v1116_v25 = vld [vmem:[%s1353_s25 + $0x8] sm:$0xf0]  ;;  %v941_v27 = vld [vmem:[%s1353_s25 + $0xc] sm:$0xf0]  ;;  %v1134_v29 = vld [vmem:[%s1353_s25 + $0x98] sm:$0xf0] }
  0x18   : > { %653 = vmatpush.bf16.msra.mxu1 %v1152_v7  ;;  %1105 = vmatmul.msk.bf16.vlgmr.msra.gmra.mxu2 %vm577_vm0, %v948_v12  ;;  %v1011_v28 = vld [vmem:[%s1353_s25 + $0x90] sm:$0xf]  ;;  %v940_v30 = vor.u32 %v1116_v25, %v939_v24  ;;  %v944_v31 = vor.u32 %v1115_v26, %v941_v27  ;;  %v971_v33 = vld [vmem:[%s1353_s25 + $0x38] sm:$0xf]  ;;  %v1123_v34 = vld [vmem:[%s1353_s25 + $0x40] sm:$0xf0] }
  0x19   : > { %v1012_v32 = vor.u32 %v1134_v29, %v1011_v28  ;;  %v972_v35 = vor.u32 %v1123_v34, %v971_v33  ;;  %v951_v36 = vld [vmem:[%s1353_s25 + $0x18] sm:$0xf]  ;;  %v1119_v37 = vld [vmem:[%s1353_s25 + $0x20] sm:$0xf0]  ;;  %v1118_v38 = vld [vmem:[%s1353_s25 + $0x1c] sm:$0xf] }
  0x1a   : > { %v953_v39 = vld [vmem:[%s1353_s25 + $0x24] sm:$0xf0]  ;;  %v1137_v41 = vld [vmem:[%s1353_s25 + $0xb0] sm:$0xf0]  ;;  %v952_v42 = vor.u32 %v1119_v37, %v951_v36  ;;  %v983_v45 = vld [vmem:[%s1353_s25 + $0x50] sm:$0xf] }
  0x1b   : > { %605 = vmatpush.bf16.msra.mxu0 %v1143_v8  ;;  %1160 = vmatpush.bf16.msra.mxu3 %v1143_v8  ;;  %v1023_v40 = vld [vmem:[%s1353_s25 + $0xa8] sm:$0xf]  ;;  %v956_v43 = vor.u32 %v1118_v38, %v953_v39  ;;  %v1126_v46 = vld [vmem:[%s1353_s25 + $0x58] sm:$0xf0]  ;;  %v963_v48 = vld [vmem:[%s1353_s25 + $0x30] sm:$0xf] }
  0x1c   : > { %654 = vmatpush.bf16.msra.mxu1 %v1151_v11  ;;  %v1024_v44 = vor.u32 %v1137_v41, %v1023_v40  ;;  %v984_v47 = vor.u32 %v1126_v46, %v983_v45  ;;  %v1122_v49 = vld [vmem:[%s1353_s25 + $0x38] sm:$0xf0]  ;;  %v1121_v50 = vld [vmem:[%s1353_s25 + $0x34] sm:$0xf]  ;;  %v965_v51 = vld [vmem:[%s1353_s25 + $0x3c] sm:$0xf0] }
  0x1d   : > { %v1133_v52 = vld [vmem:[%s1353_s25 + $0x94] sm:$0xf]  ;;  %v1013_v53 = vld [vmem:[%s1353_s25 + $0x9c] sm:$0xf0]  ;;  %v964_v54 = vor.u32 %v1122_v49, %v963_v48  ;;  %v968_v55 = vor.u32 %v1121_v50, %v965_v51  ;;  %v995_v57 = vld [vmem:[%s1353_s25 + $0x68] sm:$0xf] }
  0x1e   : > { %v1016_v56 = vor.u32 %v1133_v52, %v1013_v53  ;;  %v1129_v58 = vld [vmem:[%s1353_s25 + $0x70] sm:$0xf0]  ;;  %v975_v60 = vld [vmem:[%s1353_s25 + $0x48] sm:$0xf]  ;;  %v1124_v62 = vld [vmem:[%s1353_s25 + $0x4c] sm:$0xf] }
  0x1f   : > { %606 = vmatpush.bf16.msra.mxu0 %v1142_v13  ;;  %1161 = vmatpush.bf16.msra.mxu3 %v1142_v13  ;;  %v996_v59 = vor.u32 %v1129_v58, %v995_v57  ;;  %v1125_v61 = vld [vmem:[%s1353_s25 + $0x50] sm:$0xf0]  ;;  %v977_v63 = vld [vmem:[%s1353_s25 + $0x54] sm:$0xf0]  ;;  %v1136_v0 = vld [vmem:[%s1353_s25 + $0xac] sm:$0xf] }
  0x20   : > { %655 = vmatpush.bf16.msra.mxu1 %v1150_v14  ;;  %v976_v2 = vor.u32 %v1125_v61, %v975_v60  ;;  %v980_v3 = vor.u32 %v1124_v62, %v977_v63  ;;  %v1007_v5 = vld [vmem:[%s1353_s25 + $0x80] sm:$0xf]  ;;  %v1132_v6 = vld [vmem:[%s1353_s25 + $0x88] sm:$0xf0]  ;;  %v1127_v10 = vld [vmem:[%s1353_s25 + $0x64] sm:$0xf] }
  0x21   : > { %v987_v8 = vld [vmem:[%s1353_s25 + $0x60] sm:$0xf]  ;;  %v1128_v9 = vld [vmem:[%s1353_s25 + $0x68] sm:$0xf0]  ;;  %v1130_v19 = vld [vmem:[%s1353_s25 + $0x7c] sm:$0xf] }
  0x22   : > { %v988_v12 = vor.u32 %v1128_v9, %v987_v8  ;;  %v1001_v20 = vld [vmem:[%s1353_s25 + $0x84] sm:$0xf0]  ;;  %v1138_v24 = vld [vmem:[%s1353_s25 + $0xb8] sm:$0xf0]  ;;  %v1450_v28 = vld [vmem:[%s1556_s2] ss:$0 sm:$0xff] }
  0x23   : > { %607 = vmatpush.bf16.msra.mxu0 %v1141_v15  ;;  %1162 = vmatpush.bf16.msra.mxu3 %v1141_v15  ;;  %v1135_v15 = vld [vmem:[%s1353_s25 + $0xa0] sm:$0xf0]  ;;  %v751_v52 = vld [vmem:[%s1457_s8 + $0x10] sm:$0xff]  ;;  %v752_v61 = vld [vmem:[%s1457_s8 + $0x18] sm:$0xff] }
  0x24   : > { %656 = vmatpush.bf16.msra.mxu1 %v1149_v16  ;;  %v749_v34 = vld [vmem:[%s1457_s8] sm:$0xff] }
  0x27   : > { %608 = vmatpush.bf16.msra.mxu0 %v1140_v17  ;;  %1163 = vmatpush.bf16.msra.mxu3 %v1140_v17  ;;  %v999_v17 = vld [vmem:[%s1353_s25 + $0x78] sm:$0xf] }
  0x28   : > { %657 = vmatpush.bf16.msra.mxu1 %v1148_v18  ;;  %1106 = vmatmul.msk.bf16.gmra.mxu2 %vm577_vm0, %v960_v21 }
  0x2b   : > { %609 = vmatpush.bf16.msra.mxu0 %v1139_v22  ;;  %1164 = vmatpush.bf16.msra.mxu3 %v1139_v22  ;;  %v1004_v22 = vor.u32 %v1130_v19, %v1001_v20 }
  0x2c   : > { %658 = vmatpush.bf16.msra.mxu1 %v1147_v23 }
  0x2e   : > { %610 = vmatmul.bf16.vlgmr.msra.gmra.mxu0 %v940_v30  ;;  %640 = vmatmul.bf16.vlgmr.msra.gmra.mxu3 %v1012_v32 }
  0x2f   : > { %1165 = vmatpush.bf16.msrb.mxu3 %v1319_v1  ;;  %659 = vmatmul.bf16.vlgmr.msra.gmra.mxu1 %v944_v31  ;;  %v1025_v1 = vld [vmem:[%s1353_s25 + $0xb4] sm:$0xf0] }
  0x33   : > { %1166 = vmatpush.bf16.msrb.mxu3 %v1332_v4  ;;  %v1028_v4 = vor.u32 %v1136_v0, %v1025_v1 }
  0x37   : > { %1167 = vmatpush.bf16.msrb.mxu3 %v1152_v7  ;;  %v1008_v7 = vor.u32 %v1132_v6, %v1007_v5 }
  0x38   : > { %1107 = vmatmul.msk.bf16.gmra.mxu2 %vm577_vm0, %v972_v35 }
  0x3b   : > { %1168 = vmatpush.bf16.msrb.mxu3 %v1151_v11  ;;  %v989_v11 = vld [vmem:[%s1353_s25 + $0x6c] sm:$0xf0] }
  0x3c   : > { %v992_v13 = vor.u32 %v1127_v10, %v989_v11 }
  0x3e   : > { %615 = vmatmul.bf16.gmra.mxu0 %v952_v42  ;;  %645 = vmatmul.bf16.gmra.mxu3 %v1024_v44 }
  0x3f   : > { %1169 = vmatpush.bf16.msrb.mxu3 %v1150_v14  ;;  %664 = vmatmul.bf16.gmra.mxu1 %v956_v43  ;;  %v1019_v14 = vld [vmem:[%s1353_s25 + $0x98] sm:$0xf]  ;;  %v750_v43 = vld [vmem:[%s1457_s8 + $0x8] sm:$0xff] }
  0x43   : > { %1170 = vmatpush.bf16.msrb.mxu3 %v1149_v16  ;;  %v1020_v16 = vor.u32 %v1135_v15, %v1019_v14 }
  0x47   : > { %1171 = vmatpush.bf16.msrb.mxu3 %v1148_v18  ;;  %v1131_v18 = vld [vmem:[%s1353_s25 + $0x80] sm:$0xf0] }
  0x48   : > { %1108 = vmatmul.msk.bf16.gmra.mxu2 %vm577_vm0, %v984_v47  ;;  %v1000_v21 = vor.u32 %v1131_v18, %v999_v17  ;;  %v754_v17 = vld [vmem:[%s1457_s8 + $0x28] sm:$0xff] }
  0x4b   : > { %1172 = vmatpush.bf16.msrb.mxu3 %v1147_v23  ;;  %v1031_v23 = vld [vmem:[%s1353_s25 + $0xb0] sm:$0xf] }
  0x4c   : > { %v1032_v25 = vor.u32 %v1138_v24, %v1031_v23 }
  0x4e   : > { %620 = vmatmul.bf16.gmra.mxu0 %v964_v54  ;;  %689 = vmatmul.bf16.vlgmr.msrb.gmra.mxu3 %v1016_v56 }
  0x4f   : > { %669 = vmatmul.bf16.gmra.mxu1 %v968_v55 }
  0x58   : > { %1109 = vmatmul.msk.bf16.gmra.mxu2 %vm577_vm0, %v996_v59 }
  0x5e   : > { %625 = vmatmul.bf16.gmra.mxu0 %v976_v2  ;;  %694 = vmatmul.bf16.gmra.mxu3 %v1028_v4 }
  0x5f   : > { %674 = vmatmul.bf16.gmra.mxu1 %v980_v3 }
  0x68   : > { %1110 = vmatmul.msk.bf16.gmra.mxu2 %vm577_vm0, %v1008_v7  ;;  %v753_v7 = vld [vmem:[%s1457_s8 + $0x20] sm:$0xff] }
  0x6e   : > { %630 = vmatmul.bf16.gmra.mxu0 %v988_v12 }
  0x6f   : > { %679 = vmatmul.bf16.gmra.mxu1 %v992_v13 }
  0x78   : > { %1111 = vmatmul.msk.bf16.gmra.mxu2 %vm577_vm0, %v1020_v16 }
  0x7e   : > { %635 = vmatmul.bf16.gmra.mxu0 %v1000_v21 }
  0x7f   : > { %684 = vmatmul.bf16.gmra.mxu1 %v1004_v22 }
  0x88   : > { %1112 = vmatmul.msk.bf16.gmra.mxu2 %vm577_vm0, %v1032_v25 }
  0x9b   : > { %v709_v26 = vpop.f32.mrf.mxu2 }
  0xa3   : > { %v711_v27 = vpop.f32.mrf.mxu2 }
  0xab   : > { %v611_v29 = vpop.f32.mrf.mxu0  ;;  %v714_v32 = vpop.f32.mrf.mxu2 }
  0xac   : > { %v660_v30 = vpop.f32.mrf.mxu1  ;;  %v612_v31 = vadd.f32 %v1450_v28, %v611_v29 }
  0xae   : > { %v661_v33 = vadd.f32 %v660_v30, %v612_v31 }
  0xb0   : > { %v710_v35 = vadd.f32 %v709_v26, %v661_v33 }
  0xb1   : > { %v1477_v63 = vpop.f32.mrf.mxu3 }
  0xb2   : > { %v765_v36 = vadd.f32 %v749_v34, %v710_v35 }
  0xb3   : > { %v613_v37 = vpop.f32.mrf.mxu0  ;;  %v716_v41 = vpop.f32.mrf.mxu2 }
  0xb4   : > { %v662_v38 = vpop.f32.mrf.mxu1  ;;  %v781_v39 = vmax.f32 %v765_v36, 0.0  ;;  %v614_v40 = vadd.f32 %v1450_v28, %v613_v37  ;;  %v756_v37 = vld [vmem:[%s1457_s8 + $0x38] sm:$0xff] }
  0xb6   : > { %797 = vst.msk [vmem:[%s1463_s10] sm:$0xff] %vm577_vm0, %v781_v39  ;;  %v663_v42 = vadd.f32 %v662_v38, %v614_v40 }
  0xb8   : > { %v712_v44 = vadd.f32 %v711_v27, %v663_v42  ;;  %v755_v27 = vld [vmem:[%s1457_s8 + $0x30] sm:$0xff] }
  0xb9   : > { %v1483_v12 = vpop.f32.mrf.mxu3 }
  0xba   : > { %v766_v45 = vadd.f32 %v750_v43, %v712_v44 }
  0xbb   : > { %v616_v46 = vpop.f32.mrf.mxu0  ;;  %v719_v50 = vpop.f32.mrf.mxu2 }
  0xbc   : > { %v665_v47 = vpop.f32.mrf.mxu1  ;;  %v782_v48 = vmax.f32 %v766_v45, 0.0  ;;  %v617_v49 = vadd.f32 %v1450_v28, %v616_v46 }
  0xbe   : > { %798 = vst.msk [vmem:[%s1463_s10 + $0x8] sm:$0xff] %vm577_vm0, %v782_v48  ;;  %v666_v51 = vadd.f32 %v665_v47, %v617_v49  ;;  %v757_v47 = vld [vmem:[%s1457_s8 + $0x40] sm:$0xff] }
  0xc0   : > { %v715_v53 = vadd.f32 %v714_v32, %v666_v51 }
  0xc1   : > { %v1490_v25 = vpop.f32.mrf.mxu3 }
  0xc2   : > { %v767_v54 = vadd.f32 %v751_v52, %v715_v53 }
  0xc3   : > { %v618_v55 = vpop.f32.mrf.mxu0  ;;  %v721_v59 = vpop.f32.mrf.mxu2 }
  0xc4   : > { %v667_v56 = vpop.f32.mrf.mxu1  ;;  %v783_v57 = vmax.f32 %v767_v54, 0.0  ;;  %v619_v58 = vadd.f32 %v1450_v28, %v618_v55 }
  0xc6   : > { %799 = vst.msk [vmem:[%s1463_s10 + $0x10] sm:$0xff] %vm577_vm0, %v783_v57  ;;  %v668_v60 = vadd.f32 %v667_v56, %v619_v58  ;;  %v758_v57 = vld [vmem:[%s1457_s8 + $0x48] sm:$0xff]  ;;  %v642_v58 = vadd.f32 %v1450_v28, %v1477_v63  ;;  %v644_v63 = vadd.f32 %v1450_v28, %v1483_v12 }
  0xc8   : > { %v717_v62 = vadd.f32 %v716_v41, %v668_v60 }
  0xc9   : > { %v1499_v38 = vpop.f32.mrf.mxu3 }
  0xca   : > { %v768_v0 = vadd.f32 %v752_v61, %v717_v62 }
  0xcb   : > { %v621_v1 = vpop.f32.mrf.mxu0  ;;  %v724_v5 = vpop.f32.mrf.mxu2 }
  0xcc   : > { %v670_v2 = vpop.f32.mrf.mxu1  ;;  %v784_v3 = vmax.f32 %v768_v0, 0.0  ;;  %v622_v4 = vadd.f32 %v1450_v28, %v621_v1 }
  0xce   : > { %800 = vst.msk [vmem:[%s1463_s10 + $0x18] sm:$0xff] %vm577_vm0, %v784_v3  ;;  %v671_v6 = vadd.f32 %v670_v2, %v622_v4 }
  0xd0   : > { %v720_v8 = vadd.f32 %v719_v50, %v671_v6 }
  0xd1   : > { %v690_v49 = vpop.f32.mrf.mxu3 }
  0xd2   : > { %v769_v9 = vadd.f32 %v753_v7, %v720_v8  ;;  %v691_v0 = vadd.f32 %v690_v49, %v642_v58  ;;  %v759_v8 = vld [vmem:[%s1457_s8 + $0x50] sm:$0xff] }
  0xd3   : > { %v623_v10 = vpop.f32.mrf.mxu0  ;;  %v726_v15 = vpop.f32.mrf.mxu2 }
  0xd4   : > { %v672_v11 = vpop.f32.mrf.mxu1  ;;  %v785_v13 = vmax.f32 %v769_v9, 0.0  ;;  %v624_v14 = vadd.f32 %v1450_v28, %v623_v10 }
  0xd6   : > { %801 = vst.msk [vmem:[%s1463_s10 + $0x20] sm:$0xff] %vm577_vm0, %v785_v13  ;;  %v673_v16 = vadd.f32 %v672_v11, %v624_v14 }
  0xd8   : > { %v722_v18 = vadd.f32 %v721_v59, %v673_v16 }
  0xd9   : > { %v692_v3 = vpop.f32.mrf.mxu3 }
  0xda   : > { %v770_v19 = vadd.f32 %v754_v17, %v722_v18  ;;  %v693_v16 = vadd.f32 %v692_v3, %v644_v63 }
  0xdb   : > { %v626_v20 = vpop.f32.mrf.mxu0  ;;  %v729_v24 = vpop.f32.mrf.mxu2 }
  0xdc   : > { %v675_v21 = vpop.f32.mrf.mxu1  ;;  %v786_v22 = vmax.f32 %v770_v19, 0.0  ;;  %v627_v23 = vadd.f32 %v1450_v28, %v626_v20  ;;  %v762_v20 = vld [vmem:[%s1457_s8 + $0x68] sm:$0xff] }
  0xde   : > { %802 = vst.msk [vmem:[%s1463_s10 + $0x28] sm:$0xff] %vm577_vm0, %v786_v22  ;;  %v676_v26 = vadd.f32 %v675_v21, %v627_v23  ;;  %v760_v23 = vld [vmem:[%s1457_s8 + $0x58] sm:$0xff] }
  0xe0   : > { %v725_v29 = vadd.f32 %v724_v5, %v676_v26  ;;  %v761_v5 = vld [vmem:[%s1457_s8 + $0x60] sm:$0xff] }
  0xe1   : > { %v695_v22 = vpop.f32.mrf.mxu3 }
  0xe2   : > { %v771_v30 = vadd.f32 %v755_v27, %v725_v29 }
  0xe3   : > { %v628_v31 = vpop.f32.mrf.mxu0  ;;  %v731_v35 = vpop.f32.mrf.mxu2 }
  0xe4   : > { %v677_v32 = vpop.f32.mrf.mxu1  ;;  %v787_v33 = vmax.f32 %v771_v30, 0.0  ;;  %v629_v34 = vadd.f32 %v1450_v28, %v628_v31 }
  0xe6   : > { %803 = vst.msk [vmem:[%s1463_s10 + $0x30] sm:$0xff] %vm577_vm0, %v787_v33  ;;  %v678_v36 = vadd.f32 %v677_v32, %v629_v34  ;;  %v763_v34 = vld [vmem:[%s1457_s8 + $0x70] sm:$0xff] }
  0xe8   : > { %v727_v39 = vadd.f32 %v726_v15, %v678_v36  ;;  %v649_v36 = vadd.f32 %v1450_v28, %v1499_v38 }
  0xea   : > { %v772_v40 = vadd.f32 %v756_v37, %v727_v39  ;;  %v697_v37 = vpop.f32.mrf.mxu3 }
  0xeb   : > { %v631_v41 = vpop.f32.mrf.mxu0  ;;  %v734_v45 = vpop.f32.mrf.mxu2 }
  0xec   : > { %v680_v42 = vpop.f32.mrf.mxu1  ;;  %v788_v43 = vmax.f32 %v772_v40, 0.0  ;;  %v632_v44 = vadd.f32 %v1450_v28, %v631_v41  ;;  %v698_v40 = vadd.f32 %v697_v37, %v649_v36 }
  0xee   : > { %804 = vst.msk [vmem:[%s1463_s10 + $0x38] sm:$0xff] %vm577_vm0, %v788_v43  ;;  %v681_v46 = vadd.f32 %v680_v42, %v632_v44  ;;  %v764_v42 = vld [vmem:[%s1457_s8 + $0x78] sm:$0xff] }
  0xf0   : > { %v730_v48 = vadd.f32 %v729_v24, %v681_v46  ;;  %v647_v24 = vadd.f32 %v1450_v28, %v1490_v25 }
  0xf2   : > { %v773_v50 = vadd.f32 %v757_v47, %v730_v48  ;;  %v696_v31 = vadd.f32 %v695_v22, %v647_v24 }
  0xf3   : > { %v633_v51 = vpop.f32.mrf.mxu0  ;;  %v736_v55 = vpop.f32.mrf.mxu2 }
  0xf4   : > { %v682_v52 = vpop.f32.mrf.mxu1  ;;  %v789_v53 = vmax.f32 %v773_v50, 0.0  ;;  %v634_v54 = vadd.f32 %v1450_v28, %v633_v51 }
  0xf6   : > { %805 = vst.msk [vmem:[%s1463_s10 + $0x40] sm:$0xff] %vm577_vm0, %v789_v53  ;;  %v683_v56 = vadd.f32 %v682_v52, %v634_v54 }
  0xf8   : > { %v732_v59 = vadd.f32 %v731_v35, %v683_v56 }
  0xfa   : > { %v774_v60 = vadd.f32 %v758_v57, %v732_v59 }
  0xfb   : > { %v636_v61 = vpop.f32.mrf.mxu0  ;;  %v739_v4 = vpop.f32.mrf.mxu2 }
  0xfc   : > { %v685_v62 = vpop.f32.mrf.mxu1  ;;  %v790_v1 = vmax.f32 %v774_v60, 0.0  ;;  %v637_v2 = vadd.f32 %v1450_v28, %v636_v61  ;;  %v740_v6 = vadd.f32 %v739_v4, %v691_v0 }
  0xfe   : > { %806 = vst.msk [vmem:[%s1463_s10 + $0x48] sm:$0xff] %vm577_vm0, %v790_v1  ;;  %v686_v7 = vadd.f32 %v685_v62, %v637_v2  ;;  %v777_v9 = vadd.f32 %v761_v5, %v740_v6 }
 0x100   : > { %v735_v10 = vadd.f32 %v734_v45, %v686_v7  ;;  %v793_v11 = vmax.f32 %v777_v9, 0.0 }
 0x102   : > { %v775_v13 = vadd.f32 %v759_v8, %v735_v10  ;;  %809 = vst.msk [vmem:[%s1463_s10 + $0x60] sm:$0xff] %vm577_vm0, %v793_v11 }
 0x103   : > { %v638_v14 = vpop.f32.mrf.mxu0  ;;  %v741_v19 = vpop.f32.mrf.mxu2 }
 0x104   : > { %v687_v15 = vpop.f32.mrf.mxu1  ;;  %v791_v17 = vmax.f32 %v775_v13, 0.0  ;;  %v639_v18 = vadd.f32 %v1450_v28, %v638_v14  ;;  %v742_v12 = vadd.f32 %v741_v19, %v693_v16 }
 0x106   : > { %807 = vst.msk [vmem:[%s1463_s10 + $0x50] sm:$0xff] %vm577_vm0, %v791_v17  ;;  %v688_v21 = vadd.f32 %v687_v15, %v639_v18  ;;  %v778_v26 = vadd.f32 %v762_v20, %v742_v12 }
 0x108   : > { %v737_v27 = vadd.f32 %v736_v55, %v688_v21  ;;  %v794_v29 = vmax.f32 %v778_v26, 0.0 }
 0x10a   : > { %v776_v30 = vadd.f32 %v760_v23, %v737_v27  ;;  %810 = vst.msk [vmem:[%s1463_s10 + $0x68] sm:$0xff] %vm577_vm0, %v794_v29 }
 0x10b   : > { %v744_v33 = vpop.f32.mrf.mxu2 }
 0x10c   : > { %v792_v32 = vmax.f32 %v776_v30, 0.0  ;;  %v745_v35 = vadd.f32 %v744_v33, %v696_v31 }
 0x10e   : > { %808 = vst.msk [vmem:[%s1463_s10 + $0x58] sm:$0xff] %vm577_vm0, %v792_v32  ;;  %v779_v25 = vadd.f32 %v763_v34, %v745_v35 }
 0x110   : > { %v795_v39 = vmax.f32 %v779_v25, 0.0 }
 0x112   : > { %811 = vst.msk [vmem:[%s1463_s10 + $0x70] sm:$0xff] %vm577_vm0, %v795_v39 }
 0x113   : > { %v746_v41 = vpop.f32.mrf.mxu2 }
 0x114   : > { %v747_v43 = vadd.f32 %v746_v41, %v698_v40 }
 0x116   : > { %v780_v44 = vadd.f32 %v764_v42, %v747_v43 }
 0x118   : > { %v796_v45 = vmax.f32 %v780_v44, 0.0 }
 0x11a   : > { %812 = vst.msk [vmem:[%s1463_s10 + $0x78] sm:$0xff] %vm577_vm0, %v796_v45 }
 0x11b PF: > { %s14_s19 = sadd.s32 1, %s1254_s19   ;;  %s1559_s15 = smov %s1246_s17 }
 0x11c   : > { %p11_p7 = scmp.ge.s32.totalorder %s14_s19, 6   ;;  %s1560_s16 = smov %s1250_s18 }
 0x11d   : > { %s1561_s17 = smov %s1564_s20  ;;  %s1562_s18 = smov %s1568_s21 }
 0x11e   :  { %13 = sbr.rel (!%p11_p7) target bundleno = 3 (0x3), region = 69 }

// kernel: model_forward.7
= control target key start
LH: loop header
LB: loop body
LE: loop exit
PB: predicated region body
PF: predicated region fallthrough
CT: control target
= control target key end

     0   :  { %s896_s12 = smov 0   ;;  %s898_s13 = smov 0   ;;  %s1042_s0 = inlined_call_operand.vmem [shape: bf16[2,64,288], index: 0, kind: input, shape index: {}]   ;;  %s1043_s1 = inlined_call_operand.vmem [shape: bf16[288,64], index: 1, kind: input, shape index: {}]   ;;  %s1044_s2 = inlined_call_operand.vmem [shape: f32[1,64], index: 2, kind: input, shape index: {}]   ;;  %s1045_s3 = inlined_call_operand.vmem [shape: f32[2,64,64], index: 3, kind: output, shape index: {}]  }
   0x1   :  { %s900_s14 = smov 0  }
   0x2 LB: > { %s25_s15 = sadd.s32 1, %s870_s13  ;;  %p649_p0 = scmp.ge.s32.totalorder %s874_s14, 1  ;;  %s874_s14 = sphi %s900_s14, %s13_s14   ;;  %s870_s13 = sphi %s898_s13, %s1047_s13   ;;  %s866_s12 = sphi %s896_s12, %s1046_s12  }
   0x3   : > { %p27_p1 = scmp.ge.s32.totalorder %s25_s15, 2  ;;  %p159_p2 = scmp.lt.s32.totalorder %s874_s14, 3 }
   0x5   : > { %s1049_s15 = smov (%p27_p1, %s25_s15), 0  ;;  %p160_p3 = pnand %p649_p0, %p159_p2 }
   0x6   : > { %p193_p4 = scmp.lt.s32.totalorder (!%p160_p3), %s866_s12, 1 }
   0x7   : > { %163 = sbr.rel (%p160_p3) target bundleno = 225 (0xe1), region = 32 }
   0xc   : > { %v799_v0 = vld [vmem:[%s1043_s1 + $0x38] sm:$0xff]  ;;  %v809_v2 = vld [vmem:[%s1043_s1 + $0x88] sm:$0xff]  ;;  %v798_v3 = vld [vmem:[%s1043_s1 + $0x30] sm:$0xff]  ;;  %s1051_s12 = smov (!%p193_p4, %s866_s12), 1  ;;  %vm438_vm0 = vcmask 261120   ;;  %vm546_vm1 = vcmask 523264  }
   0xd   : > { %v920_v1 = vld [vmem:[%s1043_s1 + $0x78] sm:$0xff]  ;;  %451 = vmatpush.bf16.msra.mxu0 %v799_v0  ;;  %810 = vmatpush.bf16.msra.mxu3 %v799_v0  ;;  %v806_v4 = vld [vmem:[%s1043_s1 + $0x70] sm:$0xff]  ;;  %v808_v5 = vld [vmem:[%s1043_s1 + $0x80] sm:$0xff]  ;;  %s826_s28 = smul.u32 96, %s1051_s12  ;;  %s779_s9 = sshll.u32 %s1051_s12, 6 }
   0xe   : > { %818 = vmatpush.bf16.msra.mxu1 %v920_v1  ;;  %515 = vmatpush.bf16.msra.mxu2 %v809_v2  ;;  %v797_v6 = vld [vmem:[%s1043_s1 + $0x28] sm:$0xff]  ;;  %v796_v11 = vld [vmem:[%s1043_s1 + $0x20] sm:$0xff]  ;;  %v795_v13 = vld [vmem:[%s1043_s1 + $0x18] sm:$0xff]  ;;  %s1015_s11 = scalar_lea.vmem %s1045_s3, %s779_s9 }
   0xf   : > { %s944_s6 = scalar_lea.vmem %s1042_s0, %s826_s28  ;;  %v805_v7 = vld [vmem:[%s1043_s1 + $0x68] sm:$0xff]  ;;  %v804_v12 = vld [vmem:[%s1043_s1 + $0x60] sm:$0xff]  ;;  %v803_v14 = vld [vmem:[%s1043_s1 + $0x58] sm:$0xff] }
  0x10   : > { %v663_v8 = vld [vmem:[%s944_s6 + $0x8] sm:$0xf]  ;;  %v782_v9 = vld [vmem:[%s944_s6 + $0x10] sm:$0xf0]  ;;  %v675_v17 = vld [vmem:[%s944_s6 + $0x20] sm:$0xf] }
  0x11   : > { %452 = vmatpush.bf16.msra.mxu0 %v798_v3  ;;  %811 = vmatpush.bf16.msra.mxu3 %v798_v3  ;;  %v664_v10 = vor.u32 %v782_v9, %v663_v8  ;;  %v794_v15 = vld [vmem:[%s1043_s1 + $0x10] sm:$0xff]  ;;  %v785_v18 = vld [vmem:[%s944_s6 + $0x28] sm:$0xf0]  ;;  %v792_v22 = vld [vmem:[%s1043_s1] sm:$0xff] }
  0x12   : > { %819 = vmatpush.bf16.msra.mxu1 %v806_v4  ;;  %516 = vmatpush.bf16.msra.mxu2 %v808_v5  ;;  %v802_v16 = vld [vmem:[%s1043_s1 + $0x50] sm:$0xff]  ;;  %v793_v19 = vld [vmem:[%s1043_s1 + $0x8] sm:$0xff]  ;;  %v676_v21 = vor.u32 %v785_v18, %v675_v17  ;;  %v667_v23 = vld [vmem:[%s944_s6 + $0x18] sm:$0xf] }
  0x13   : > { %v801_v20 = vld [vmem:[%s1043_s1 + $0x48] sm:$0xff]  ;;  %v784_v24 = vld [vmem:[%s944_s6 + $0x20] sm:$0xf0]  ;;  %v655_v25 = vld [vmem:[%s944_s6] sm:$0xf] }
  0x14   : > { %v781_v26 = vld [vmem:[%s944_s6 + $0x8] sm:$0xf0]  ;;  %v800_v27 = vld [vmem:[%s1043_s1 + $0x40] sm:$0xff]  ;;  %v783_v28 = vld [vmem:[%s944_s6 + $0x1c] sm:$0xf]  ;;  %v668_v30 = vor.u32 %v784_v24, %v667_v23 }
  0x15   : > { %453 = vmatpush.bf16.msra.mxu0 %v797_v6  ;;  %812 = vmatpush.bf16.msra.mxu3 %v797_v6  ;;  %v669_v29 = vld [vmem:[%s944_s6 + $0x24] sm:$0xf0]  ;;  %v656_v31 = vor.u32 %v781_v26, %v655_v25  ;;  %v687_v33 = vld [vmem:[%s944_s6 + $0x38] sm:$0xf]  ;;  %v788_v34 = vld [vmem:[%s944_s6 + $0x40] sm:$0xf0] }
  0x16   : > { %820 = vmatpush.bf16.msra.mxu1 %v805_v7  ;;  %773 = vmatmul.msk.bf16.vlgmr.msra.gmra.mxu2 %vm438_vm0, %v664_v10  ;;  %v672_v32 = vor.u32 %v783_v28, %v669_v29  ;;  %v688_v35 = vor.u32 %v788_v34, %v687_v33  ;;  %v679_v36 = vld [vmem:[%s944_s6 + $0x30] sm:$0xf]  ;;  %v787_v37 = vld [vmem:[%s944_s6 + $0x38] sm:$0xf0]  ;;  %v786_v38 = vld [vmem:[%s944_s6 + $0x34] sm:$0xf] }
  0x17   : > { %v681_v39 = vld [vmem:[%s944_s6 + $0x3c] sm:$0xf0]  ;;  %v680_v40 = vor.u32 %v787_v37, %v679_v36  ;;  %v699_v42 = vld [vmem:[%s944_s6 + $0x50] sm:$0xf]  ;;  %v791_v43 = vld [vmem:[%s944_s6 + $0x58] sm:$0xf0] }
  0x18   : > { %v684_v41 = vor.u32 %v786_v38, %v681_v39  ;;  %v700_v44 = vor.u32 %v791_v43, %v699_v42  ;;  %v780_v45 = vld [vmem:[%s944_s6 + $0x4] sm:$0xf]  ;;  %v657_v46 = vld [vmem:[%s944_s6 + $0xc] sm:$0xf0]  ;;  %v691_v48 = vld [vmem:[%s944_s6 + $0x48] sm:$0xf] }
  0x19   : > { %454 = vmatpush.bf16.msra.mxu0 %v796_v11  ;;  %813 = vmatpush.bf16.msra.mxu3 %v796_v11  ;;  %v660_v47 = vor.u32 %v780_v45, %v657_v46  ;;  %v790_v49 = vld [vmem:[%s944_s6 + $0x50] sm:$0xf0]  ;;  %v789_v50 = vld [vmem:[%s944_s6 + $0x4c] sm:$0xf]  ;;  %v693_v51 = vld [vmem:[%s944_s6 + $0x54] sm:$0xf0] }
  0x1a   : > { %821 = vmatpush.bf16.msra.mxu1 %v804_v12  ;;  %v692_v52 = vor.u32 %v790_v49, %v691_v48  ;;  %v696_v53 = vor.u32 %v789_v50, %v693_v51  ;;  %v851_v58 = vld [vmem:[%s1044_s2] ss:$0 sm:$0xff] }
  0x1d   : > { %455 = vmatpush.bf16.msra.mxu0 %v795_v13  ;;  %814 = vmatpush.bf16.msra.mxu3 %v795_v13 }
  0x1e   : > { %822 = vmatpush.bf16.msra.mxu1 %v803_v14 }
  0x21   : > { %456 = vmatpush.bf16.msra.mxu0 %v794_v15  ;;  %815 = vmatpush.bf16.msra.mxu3 %v794_v15 }
  0x22   : > { %823 = vmatpush.bf16.msra.mxu1 %v802_v16 }
  0x25   : > { %457 = vmatpush.bf16.msra.mxu0 %v793_v19  ;;  %816 = vmatpush.bf16.msra.mxu3 %v793_v19 }
  0x26   : > { %824 = vmatpush.bf16.msra.mxu1 %v801_v20  ;;  %774 = vmatmul.msk.bf16.gmra.mxu2 %vm438_vm0, %v676_v21 }
  0x29   : > { %458 = vmatpush.bf16.msra.mxu0 %v792_v22  ;;  %817 = vmatpush.bf16.msra.mxu3 %v792_v22 }
  0x2a   : > { %825 = vmatpush.bf16.msra.mxu1 %v800_v27 }
  0x2c   : > { %464 = vmatmul.bf16.vlgmr.msra.gmra.mxu3 %v668_v30  ;;  %459 = vmatmul.bf16.vlgmr.msra.gmra.mxu0 %v656_v31 }
  0x2d   : > { %480 = vmatpush.bf16.msrb.mxu0 %v920_v1  ;;  %493 = vmatmul.bf16.vlgmr.msra.gmra.mxu1 %v672_v32 }
  0x31   : > { %481 = vmatpush.bf16.msrb.mxu0 %v806_v4 }
  0x35   : > { %482 = vmatpush.bf16.msrb.mxu0 %v805_v7 }
  0x36   : > { %775 = vmatmul.msk.bf16.gmra.mxu2 %vm438_vm0, %v688_v35 }
  0x39   : > { %483 = vmatpush.bf16.msrb.mxu0 %v804_v12 }
  0x3c   : > { %469 = vmatmul.bf16.gmra.mxu3 %v680_v40 }
  0x3d   : > { %484 = vmatpush.bf16.msrb.mxu0 %v803_v14  ;;  %498 = vmatmul.bf16.gmra.mxu1 %v684_v41 }
  0x41   : > { %485 = vmatpush.bf16.msrb.mxu0 %v802_v16 }
  0x45   : > { %486 = vmatpush.bf16.msrb.mxu0 %v801_v20 }
  0x46   : > { %776 = vmatmul.msk.bf16.gmra.mxu2 %vm438_vm0, %v700_v44 }
  0x49   : > { %487 = vmatpush.bf16.msrb.mxu0 %v800_v27 }
  0x4c   : > { %488 = vmatmul.bf16.vlgmr.msrb.gmra.mxu0 %v660_v47  ;;  %474 = vmatmul.bf16.gmra.mxu3 %v692_v52 }
  0x4d   : > { %503 = vmatmul.bf16.gmra.mxu1 %v696_v53 }
  0x99   : > { %v518_v54 = vpop.f32.mrf.mxu2 }
  0xa1   : > { %v520_v55 = vpop.f32.mrf.mxu2 }
  0xa9   : > { %v523_v56 = vpop.f32.mrf.mxu2  ;;  %v460_v63 = vpop.f32.mrf.mxu0 }
  0xaa   : > { %v494_v57 = vpop.f32.mrf.mxu1  ;;  %v461_v15 = vadd.f32 %v851_v58, %v460_v63 }
  0xaf   : > { %v465_v59 = vpop.f32.mrf.mxu3 }
  0xb0   : > { %v466_v60 = vadd.f32 %v851_v58, %v465_v59 }
  0xb1   : > { %v525_v0 = vpop.f32.mrf.mxu2  ;;  %v462_v8 = vpop.f32.mrf.mxu0 }
  0xb2   : > { %v495_v61 = vadd.f32 %v494_v57, %v466_v60  ;;  %v496_v62 = vpop.f32.mrf.mxu1  ;;  %v463_v27 = vadd.f32 %v851_v58, %v462_v8 }
  0xb4   : > { %v524_v1 = vadd.f32 %v523_v56, %v495_v61 }
  0xb6   : > { %v540_v2 = vmax.f32 %v524_v1, 0.0 }
  0xb7   : > { %v467_v3 = vpop.f32.mrf.mxu3 }
  0xb8   : > { %549 = vst.msk [vmem:[%s1015_s11 + $0x10] sm:$0xff] %vm546_vm1, %v540_v2  ;;  %v468_v4 = vadd.f32 %v851_v58, %v467_v3 }
  0xb9   : > { %v528_v9 = vpop.f32.mrf.mxu2 }
  0xba   : > { %v497_v5 = vadd.f32 %v496_v62, %v468_v4  ;;  %v499_v6 = vpop.f32.mrf.mxu1 }
  0xbc   : > { %v526_v7 = vadd.f32 %v525_v0, %v497_v5 }
  0xbe   : > { %v541_v10 = vmax.f32 %v526_v7, 0.0 }
  0xbf   : > { %v470_v11 = vpop.f32.mrf.mxu3 }
  0xc0   : > { %550 = vst.msk [vmem:[%s1015_s11 + $0x18] sm:$0xff] %vm546_vm1, %v541_v10  ;;  %v471_v12 = vadd.f32 %v851_v58, %v470_v11 }
  0xc1   : > { %v530_v19 = vpop.f32.mrf.mxu2 }
  0xc2   : > { %v500_v13 = vadd.f32 %v499_v6, %v471_v12  ;;  %v501_v16 = vpop.f32.mrf.mxu1 }
  0xc4   : > { %v529_v14 = vadd.f32 %v528_v9, %v500_v13 }
  0xc6   : > { %v542_v17 = vmax.f32 %v529_v14, 0.0 }
  0xc7   : > { %v472_v21 = vpop.f32.mrf.mxu3 }
  0xc8   : > { %551 = vst.msk [vmem:[%s1015_s11 + $0x20] sm:$0xff] %vm546_vm1, %v542_v17  ;;  %v473_v22 = vadd.f32 %v851_v58, %v472_v21 }
  0xc9   : > { %v489_v18 = vpop.f32.mrf.mxu0  ;;  %v533_v34 = vpop.f32.mrf.mxu2 }
  0xca   : > { %v490_v20 = vadd.f32 %v489_v18, %v461_v15  ;;  %v502_v24 = vadd.f32 %v501_v16, %v473_v22  ;;  %v504_v30 = vpop.f32.mrf.mxu1 }
  0xcc   : > { %v519_v23 = vadd.f32 %v518_v54, %v490_v20  ;;  %v531_v26 = vadd.f32 %v530_v19, %v502_v24 }
  0xce   : > { %v538_v25 = vmax.f32 %v519_v23, 0.0  ;;  %v543_v28 = vmax.f32 %v531_v26, 0.0 }
  0xcf   : > { %v475_v32 = vpop.f32.mrf.mxu3 }
  0xd0   : > { %547 = vst.msk [vmem:[%s1015_s11] sm:$0xff] %vm546_vm1, %v538_v25  ;;  %v476_v33 = vadd.f32 %v851_v58, %v475_v32 }
  0xd1   : > { %v491_v29 = vpop.f32.mrf.mxu0  ;;  %552 = vst.msk [vmem:[%s1015_s11 + $0x28] sm:$0xff] %vm546_vm1, %v543_v28  ;;  %v535_v44 = vpop.f32.mrf.mxu2 }
  0xd2   : > { %v492_v31 = vadd.f32 %v491_v29, %v463_v27  ;;  %v505_v36 = vadd.f32 %v504_v30, %v476_v33  ;;  %v506_v42 = vpop.f32.mrf.mxu1 }
  0xd4   : > { %v521_v35 = vadd.f32 %v520_v55, %v492_v31  ;;  %v534_v38 = vadd.f32 %v533_v34, %v505_v36 }
  0xd6   : > { %v539_v37 = vmax.f32 %v521_v35, 0.0  ;;  %v544_v39 = vmax.f32 %v534_v38, 0.0 }
  0xd7   : > { %v477_v40 = vpop.f32.mrf.mxu3 }
  0xd8   : > { %548 = vst.msk [vmem:[%s1015_s11 + $0x8] sm:$0xff] %vm546_vm1, %v539_v37  ;;  %v478_v41 = vadd.f32 %v851_v58, %v477_v40 }
  0xd9   : > { %553 = vst.msk [vmem:[%s1015_s11 + $0x30] sm:$0xff] %vm546_vm1, %v544_v39 }
  0xda   : > { %v507_v43 = vadd.f32 %v506_v42, %v478_v41 }
  0xdc   : > { %v536_v45 = vadd.f32 %v535_v44, %v507_v43 }
  0xde   : > { %v545_v46 = vmax.f32 %v536_v45, 0.0 }
  0xe0   : > { %554 = vst.msk [vmem:[%s1015_s11 + $0x38] sm:$0xff] %vm546_vm1, %v545_v46 }
  0xe1 PF: > { %s13_s14 = sadd.s32 1, %s874_s14   ;;  %s1046_s12 = smov %s870_s13 }
  0xe2   : > { %p10_p5 = scmp.ge.s32.totalorder %s13_s14, 4   ;;  %s1047_s13 = smov %s1049_s15 }
  0xe4   :  { %12 = sbr.rel (!%p10_p5) target bundleno = 2 (0x2), region = 62 }

// kernel: model_forward.8
= control target key start
LH: loop header
LB: loop body
LE: loop exit
PB: predicated region body
PF: predicated region fallthrough
CT: control target
= control target key end

     0   :  { %s519_s12 = smov 0   ;;  %s521_s13 = smov 0   ;;  %s569_s0 = inlined_call_operand.vmem [shape: bf16[2,64,32], index: 0, kind: input, shape index: {}]   ;;  %s570_s1 = inlined_call_operand.vmem [shape: bf16[32,64], index: 1, kind: input, shape index: {}]   ;;  %s571_s2 = inlined_call_operand.vmem [shape: f32[1,64], index: 2, kind: input, shape index: {}]   ;;  %s572_s3 = inlined_call_operand.vmem [shape: f32[2,64,64], index: 3, kind: output, shape index: {}]  }
   0x1   :  { %s523_s14 = smov 0  }
   0x2 LB: > { %s25_s15 = sadd.s32 1, %s493_s13  ;;  %p401_p0 = scmp.ge.s32.totalorder %s497_s14, 1  ;;  %s497_s14 = sphi %s523_s14, %s13_s14   ;;  %s493_s13 = sphi %s521_s13, %s574_s13   ;;  %s489_s12 = sphi %s519_s12, %s573_s12  }
   0x3   : > { %p27_p1 = scmp.ge.s32.totalorder %s25_s15, 2  ;;  %p158_p2 = scmp.lt.s32.totalorder %s497_s14, 3 }
   0x5   : > { %s576_s15 = smov (%p27_p1, %s25_s15), 0  ;;  %p159_p3 = pnand %p401_p0, %p158_p2 }
   0x6   : > { %p191_p4 = scmp.lt.s32.totalorder (!%p159_p3), %s489_s12, 1 }
   0x7   : > { %162 = sbr.rel (%p159_p3) target bundleno = 165 (0xa5), region = 32 }
   0xc   : > { %v443_v0 = vld [vmem:[%s570_s1 + $0x8] sm:$0xff]  ;;  %v442_v1 = vld [vmem:[%s570_s1] sm:$0xff]  ;;  %s578_s12 = smov (!%p191_p4, %s489_s12), 1  ;;  %vm259_vm0 = vcmask 261120   ;;  %vm301_vm1 = vcmask 523264  }
   0xd   : > { %278 = vmatpush.bf16.msra.mxu0 %v443_v0  ;;  %444 = vmatpush.bf16.msra.mxu1 %v443_v0  ;;  %s436_s20 = sshll.u32 %s578_s12, 5  ;;  %s437_s24 = sshll.u32 %s578_s12, 6  ;;  %v474_v6 = vld [vmem:[%s571_s2] ss:$0 sm:$0xff] }
   0xe   : > { %445 = vmatpush.bf16.msra.mxu2 %v443_v0  ;;  %446 = vmatpush.bf16.msra.mxu3 %v443_v0  ;;  %s198_s23 = scalar_lea.vmem %s569_s0, %s436_s20  ;;  %s208_s29 = scalar_lea.vmem %s572_s3, %s437_s24 }
   0xf   : > { %v438_v2 = vld [vmem:[%s198_s23] sm:$0xff]  ;;  %v439_v3 = vld [vmem:[%s198_s23 + $0x8] sm:$0xff]  ;;  %v440_v4 = vld [vmem:[%s198_s23 + $0x10] sm:$0xff] }
  0x10   : > { %v441_v5 = vld [vmem:[%s198_s23 + $0x18] sm:$0xff] }
  0x11   : > { %279 = vmatpush.bf16.msra.mxu0 %v442_v1  ;;  %447 = vmatpush.bf16.msra.mxu1 %v442_v1 }
  0x12   : > { %448 = vmatpush.bf16.msra.mxu2 %v442_v1  ;;  %449 = vmatpush.bf16.msra.mxu3 %v442_v1 }
  0x14   : > { %430 = vmatmul.msk.bf16.vlgmr.msra.gmra.mxu0 %vm259_vm0, %v438_v2  ;;  %431 = vmatmul.msk.bf16.vlgmr.msra.gmra.mxu1 %vm259_vm0, %v439_v3 }
  0x15   : > { %432 = vmatmul.msk.bf16.vlgmr.msra.gmra.mxu2 %vm259_vm0, %v440_v4  ;;  %433 = vmatmul.msk.bf16.vlgmr.msra.gmra.mxu3 %vm259_vm0, %v441_v5 }
  0x91   : > { %v281_v7 = vpop.f32.mrf.mxu0  ;;  %v286_v8 = vpop.f32.mrf.mxu1 }
  0x92   : > { %v282_v9 = vadd.f32 %v474_v6, %v281_v7  ;;  %v287_v10 = vadd.f32 %v474_v6, %v286_v8 }
  0x94   : > { %302 = vst.msk [vmem:[%s208_s29] sm:$0xff] %vm301_vm1, %v282_v9 }
  0x95   : > { %304 = vst.msk [vmem:[%s208_s29 + $0x10] sm:$0xff] %vm301_vm1, %v287_v10 }
  0x98   : > { %v291_v11 = vpop.f32.mrf.mxu2  ;;  %v296_v12 = vpop.f32.mrf.mxu3 }
  0x99   : > { %v292_v13 = vadd.f32 %v474_v6, %v291_v11  ;;  %v297_v14 = vadd.f32 %v474_v6, %v296_v12  ;;  %v283_v15 = vpop.f32.mrf.mxu0  ;;  %v288_v16 = vpop.f32.mrf.mxu1 }
  0x9a   : > { %v284_v17 = vadd.f32 %v474_v6, %v283_v15  ;;  %v289_v18 = vadd.f32 %v474_v6, %v288_v16 }
  0x9b   : > { %306 = vst.msk [vmem:[%s208_s29 + $0x20] sm:$0xff] %vm301_vm1, %v292_v13 }
  0x9c   : > { %308 = vst.msk [vmem:[%s208_s29 + $0x30] sm:$0xff] %vm301_vm1, %v297_v14 }
  0x9d   : > { %303 = vst.msk [vmem:[%s208_s29 + $0x8] sm:$0xff] %vm301_vm1, %v284_v17 }
  0x9e   : > { %305 = vst.msk [vmem:[%s208_s29 + $0x18] sm:$0xff] %vm301_vm1, %v289_v18 }
  0xa0   : > { %v293_v19 = vpop.f32.mrf.mxu2  ;;  %v298_v20 = vpop.f32.mrf.mxu3 }
  0xa1   : > { %v294_v21 = vadd.f32 %v474_v6, %v293_v19  ;;  %v299_v22 = vadd.f32 %v474_v6, %v298_v20 }
  0xa3   : > { %307 = vst.msk [vmem:[%s208_s29 + $0x28] sm:$0xff] %vm301_vm1, %v294_v21 }
  0xa4   : > { %309 = vst.msk [vmem:[%s208_s29 + $0x38] sm:$0xff] %vm301_vm1, %v299_v22 }
  0xa5 PF: > { %s13_s14 = sadd.s32 1, %s497_s14   ;;  %s573_s12 = smov %s493_s13 }
  0xa6   : > { %p10_p5 = scmp.ge.s32.totalorder %s13_s14, 4   ;;  %s574_s13 = smov %s576_s15 }
  0xa8   :  { %12 = sbr.rel (!%p10_p5) target bundleno = 2 (0x2), region = 62 }

// kernel: model_forward.9
= control target key start
LH: loop header
LB: loop body
LE: loop exit
PB: predicated region body
PF: predicated region fallthrough
CT: control target
= control target key end

     0   :  { %9 = vsyncpa [#allocation3], 0  ;;  %s1786_s0 = inlined_call_operand.vmem [shape: bf16[2,64,576], index: 0, kind: input, shape index: {}]   ;;  %s1787_s1 = inlined_call_operand.vmem [shape: bf16[576,64], index: 1, kind: input, shape index: {}]   ;;  %s1788_s2 = inlined_call_operand.vmem [shape: f32[1,64], index: 2, kind: input, shape index: {}]   ;;  %s1789_s3 = inlined_call_operand.vmem [shape: f32[2,64,64], index: 3, kind: input, shape index: {}]   ;;  %s1790_s4 = inlined_call_operand.hbm [shape: f32[2,64,64], index: 4, kind: output, shape index: {}]  }
   0x1   :  { %11 = vsyncpa [#allocation3 + $0x1], 0  ;;  %s1473_s15 = smov 0   ;;  %s1475_s16 = smov 0  }
   0x2   :  { %s1477_s17 = smov 0   ;;  %s1479_s18 = smov 0  }
   0x3   :  { %s1481_s19 = smov 0   ;;  %s1483_s20 = smov 0  }
   0x4 LB: > { %s991_s21 = sadd.s32 4294967295, %s1444_s20   ;;  %s992_s22 = sadd.s32 4294967294, %s1444_s20   ;;  %s1444_s20 = sphi %s1483_s20, %s17_s20   ;;  %s1440_s19 = sphi %s1481_s19, %s1797_s19   ;;  %s1436_s18 = sphi %s1479_s18, %s1796_s18   ;;  %s1432_s17 = sphi %s1477_s17, %s1795_s17   ;;  %s1428_s16 = sphi %s1475_s16, %s1794_s16   ;;  %s1424_s15 = sphi %s1473_s15, %s1793_s15  }
   0x5   : > { %s29_s23 = sadd.s32 1, %s1440_s19  ;;  %s136_s24 = sadd.s32 1, %s1432_s17 }
   0x6   : > { %p31_p0 = scmp.ge.s32.totalorder %s29_s23, 2  ;;  %p146_p1 = scmp.ne.s32.totalorder %s1432_s17, %s1428_s16 }
   0x7   : > { %p147_p2 = scmp.eq.s32.totalorder %s991_s21, 1  ;;  %p152_p3 = scmp.ne.s32.totalorder %s1428_s16, %s1424_s15 }
   0x8   : > { %s1799_s23 = smov (%p31_p0, %s29_s23), 0  ;;  %p153_p5 = scmp.eq.s32.totalorder %s992_s22, 1 }
   0x9   : > { %p1513_p4 = por %p147_p2, %p146_p1  ;;  %s131_s26 = ssub.s32 %s1440_s19, %s1799_s23 }
   0xa   : > { %p995_p6 = scmp.ge.s32.totalorder %s1444_s20, 1  ;;  %p134_p7 = scmp.eq.s32.totalorder %s131_s26, 0 }
   0xb   : > { %p1520_p8 = por %p153_p5, %p152_p3  ;;  %p204_p9 = scmp.lt.s32.totalorder %s1444_s20, 3 }
   0xc   : > { %s1526_s28 = scalar_select %p134_p7, %s1432_s17, %s136_s24  }
   0xd   : > { %p205_p10 = pnand %p995_p6, %p204_p9 }
   0xe   : > { %p245_p11 = scmp.lt.s32.totalorder (!%p205_p10), %s1436_s18, 1  ;;  %s241_s12 = sand.u32 (!%p205_p10), 1, %s1428_s16  }
   0xf   : > { %208 = sbr.rel (%p205_p10) target bundleno = 286 (0x11e), region = 36  ;;  %s996_s13 = sshll.u32 (!%p205_p10), %s241_s12, 6 }
  0x10   : > { %s1290_s14 = sshll.u32 (!%p205_p10), %s1436_s18, 6  ;;  %s1386_s9 = scalar_lea.hbm (!%p205_p10), %s1790_s4, 128 }
  0x11   : > { %s887_s26 = scalar_lea.hbm (!%p205_p10), %s1790_s4, %s1290_s14 }
  0x12   : > { %s890_s30 = sshll.u32 (!%p205_p10), %s887_s26, 4  ;;  %s891_s30 = int_to_ptr.hbm [resolvable:$true] %s890_s30 }
  0x13   : > { %s1380_s6 = sshra.s32 (!%p205_p10), %s891_s30, 4  ;;  %s1381_s6 = int_to_ptr.hbm [resolvable:$true] %s1380_s6 }
  0x14   : > { %v1261_v0 = vld [vmem:[%s1787_s1 + $0x38] sm:$0xff]  ;;  %v1260_v1 = vld [vmem:[%s1787_s1 + $0x30] sm:$0xff]  ;;  %v1259_v4 = vld [vmem:[%s1787_s1 + $0x28] sm:$0xff]  ;;  %s1557_s5 = scalar_select %p245_p11, %s1436_s18, 1  ;;  %vm683_vm0 = vcmask 523264  }
  0x15   : > { %1291 = vmatpush.bf16.msra.mxu1 %v1261_v0  ;;  %1292 = vmatpush.bf16.msra.mxu2 %v1261_v0  ;;  %v1285_v2 = vld [vmem:[%s1787_s1 + $0xf8] sm:$0xff]  ;;  %v1284_v3 = vld [vmem:[%s1787_s1 + $0xf0] sm:$0xff]  ;;  %v1283_v5 = vld [vmem:[%s1787_s1 + $0xe8] sm:$0xff]  ;;  %s874_s18 = scalar_lea.sflag [#allocation3], %s241_s12  ;;  %p1387_p1 = scmp.lt.s32.totalorder %s1381_s6, %s1790_s4 }
  0x16   : > { %696 = vmatpush.bf16.msra.mxu0 %v1261_v0  ;;  %783 = vmatpush.bf16.msra.mxu3 %v1285_v2  ;;  %v1258_v6 = vld [vmem:[%s1787_s1 + $0x20] sm:$0xff]  ;;  %v1257_v8 = vld [vmem:[%s1787_s1 + $0x18] sm:$0xff]  ;;  %v1256_v10 = vld [vmem:[%s1787_s1 + $0x10] sm:$0xff]  ;;  %s1307_s10 = smul.u32 160, %s1557_s5  ;;  %s1233_s8 = sshll.u32 %s1557_s5, 6 }
  0x17   : > { %v1282_v7 = vld [vmem:[%s1787_s1 + $0xe0] sm:$0xff]  ;;  %v1281_v9 = vld [vmem:[%s1787_s1 + $0xd8] sm:$0xff]  ;;  %v1280_v11 = vld [vmem:[%s1787_s1 + $0xd0] sm:$0xff]  ;;  %s1706_s11 = scalar_lea.vmem %s1789_s3, %s1233_s8  ;;  %s1713_s5 = scalar_lea.vmem [#allocation2], %s996_s13 }
  0x18   : > { %v1255_v12 = vld [vmem:[%s1787_s1 + $0x8] sm:$0xff]  ;;  %s1575_s24 = scalar_lea.vmem %s1786_s0, %s1307_s10  ;;  %v1254_v14 = vld [vmem:[%s1787_s1] sm:$0xff]  ;;  %v1277_v19 = vld [vmem:[%s1787_s1 + $0xb8] sm:$0xff]  ;;  %s888_s29 = sshll.u32 %s1713_s5, 4  ;;  %s889_s29 = int_to_ptr.vmem [resolvable:$true] %s888_s29 }
  0x19   : > { %1293 = vmatpush.bf16.msra.mxu1 %v1260_v1  ;;  %1294 = vmatpush.bf16.msra.mxu2 %v1260_v1  ;;  %v1279_v13 = vld [vmem:[%s1787_s1 + $0xc8] sm:$0xff]  ;;  %v1241_v16 = vld [vmem:[%s1575_s24 + $0x38] sm:$0xf0]  ;;  %v1062_v17 = vld [vmem:[%s1575_s24 + $0x78] sm:$0xf] }
  0x1a   : > { %697 = vmatpush.bf16.msra.mxu0 %v1260_v1  ;;  %784 = vmatpush.bf16.msra.mxu3 %v1284_v3  ;;  %v1022_v15 = vld [vmem:[%s1575_s24 + $0x28] sm:$0xf]  ;;  %v1251_v18 = vld [vmem:[%s1575_s24 + $0x88] sm:$0xf0]  ;;  %v1269_v20 = vld [vmem:[%s1787_s1 + $0x78] sm:$0xff] }
  0x1b   : > { %v1002_v21 = vld [vmem:[%s1575_s24] sm:$0xf]  ;;  %v1023_v23 = vor.u32 %v1241_v16, %v1022_v15  ;;  %v1063_v24 = vor.u32 %v1251_v18, %v1062_v17  ;;  %v1236_v25 = vld [vmem:[%s1575_s24 + $0x10] sm:$0xf0]  ;;  %v1235_v26 = vld [vmem:[%s1575_s24 + $0xc] sm:$0xf] }
  0x1c   : > { %v1278_v22 = vld [vmem:[%s1787_s1 + $0xc0] sm:$0xff]  ;;  %v1289_v28 = vld [vmem:[%s1787_s1 + $0x118] sm:$0xff]  ;;  %v1276_v29 = vld [vmem:[%s1787_s1 + $0xb0] sm:$0xff]  ;;  %v1003_v31 = vor.u32 %v1236_v25, %v1002_v21 }
  0x1d   : > { %1295 = vmatpush.bf16.msra.mxu1 %v1259_v4  ;;  %1296 = vmatpush.bf16.msra.mxu2 %v1259_v4  ;;  %v1012_v27 = vld [vmem:[%s1575_s24 + $0x1c] sm:$0xf0]  ;;  %v1268_v30 = vld [vmem:[%s1787_s1 + $0x70] sm:$0xff]  ;;  %v1275_v34 = vld [vmem:[%s1787_s1 + $0xa8] sm:$0xff] }
  0x1e   : > { %698 = vmatpush.bf16.msra.mxu0 %v1259_v4  ;;  %785 = vmatpush.bf16.msra.mxu3 %v1283_v5  ;;  %v1015_v32 = vor.u32 %v1235_v26, %v1012_v27  ;;  %v1288_v33 = vld [vmem:[%s1787_s1 + $0x110] sm:$0xff]  ;;  %v1267_v35 = vld [vmem:[%s1787_s1 + $0x68] sm:$0xff]  ;;  %v1274_v37 = vld [vmem:[%s1787_s1 + $0xa0] sm:$0xff] }
  0x1f   : > { %v1287_v36 = vld [vmem:[%s1787_s1 + $0x108] sm:$0xff]  ;;  %v1266_v38 = vld [vmem:[%s1787_s1 + $0x60] sm:$0xff]  ;;  %v1042_v39 = vld [vmem:[%s1575_s24 + $0x50] sm:$0xf] }
  0x20   : > { %v1246_v40 = vld [vmem:[%s1575_s24 + $0x60] sm:$0xf0]  ;;  %v1273_v42 = vld [vmem:[%s1787_s1 + $0x98] sm:$0xff]  ;;  %v1018_v44 = vld [vmem:[%s1575_s24 + $0x10] sm:$0xf] }
  0x21   : > { %1297 = vmatpush.bf16.msra.mxu1 %v1258_v6  ;;  %1298 = vmatpush.bf16.msra.mxu2 %v1258_v6  ;;  %v1286_v41 = vld [vmem:[%s1787_s1 + $0x100] sm:$0xff]  ;;  %v1265_v43 = vld [vmem:[%s1787_s1 + $0x58] sm:$0xff]  ;;  %v1043_v45 = vor.u32 %v1246_v40, %v1042_v39  ;;  %v1240_v47 = vld [vmem:[%s1575_s24 + $0x34] sm:$0xf] }
  0x22   : > { %699 = vmatpush.bf16.msra.mxu0 %v1258_v6  ;;  %786 = vmatpush.bf16.msra.mxu3 %v1282_v7  ;;  %v1238_v46 = vld [vmem:[%s1575_s24 + $0x20] sm:$0xf0]  ;;  %v1032_v48 = vld [vmem:[%s1575_s24 + $0x44] sm:$0xf0]  ;;  %v1272_v49 = vld [vmem:[%s1787_s1 + $0x90] sm:$0xff] }
  0x23   : > { %v1264_v50 = vld [vmem:[%s1787_s1 + $0x50] sm:$0xff]  ;;  %v1019_v51 = vor.u32 %v1238_v46, %v1018_v44  ;;  %v1035_v52 = vor.u32 %v1240_v47, %v1032_v48  ;;  %v1271_v53 = vld [vmem:[%s1787_s1 + $0x88] sm:$0xff]  ;;  %v1270_v55 = vld [vmem:[%s1787_s1 + $0x80] sm:$0xff] }
  0x24   : > { %v1263_v54 = vld [vmem:[%s1787_s1 + $0x48] sm:$0xff]  ;;  %v1262_v56 = vld [vmem:[%s1787_s1 + $0x40] sm:$0xff]  ;;  %v1237_v58 = vld [vmem:[%s1575_s24 + $0x18] sm:$0xf0] }
  0x25   : > { %1299 = vmatpush.bf16.msra.mxu1 %v1257_v8  ;;  %1300 = vmatpush.bf16.msra.mxu2 %v1257_v8  ;;  %v1010_v57 = vld [vmem:[%s1575_s24 + $0x8] sm:$0xf]  ;;  %v1234_v60 = vld [vmem:[%s1575_s24 + $0x4] sm:$0xf]  ;;  %v1004_v61 = vld [vmem:[%s1575_s24 + $0x14] sm:$0xf0] }
  0x26   : > { %700 = vmatpush.bf16.msra.mxu0 %v1257_v8  ;;  %787 = vmatpush.bf16.msra.mxu3 %v1281_v9  ;;  %v1011_v59 = vor.u32 %v1237_v58, %v1010_v57  ;;  %v1038_v62 = vld [vmem:[%s1575_s24 + $0x38] sm:$0xf]  ;;  %v1007_v63 = vor.u32 %v1234_v60, %v1004_v61  ;;  %v1243_v0 = vld [vmem:[%s1575_s24 + $0x48] sm:$0xf0]  ;;  %v1245_v1 = vld [vmem:[%s1575_s24 + $0x5c] sm:$0xf] }
  0x27   : > { %v1052_v2 = vld [vmem:[%s1575_s24 + $0x6c] sm:$0xf0]  ;;  %v1039_v3 = vor.u32 %v1243_v0, %v1038_v62  ;;  %v1242_v6 = vld [vmem:[%s1575_s24 + $0x40] sm:$0xf0]  ;;  %v1239_v8 = vld [vmem:[%s1575_s24 + $0x2c] sm:$0xf] }
  0x28   : > { %v1055_v4 = vor.u32 %v1245_v1, %v1052_v2  ;;  %v1030_v5 = vld [vmem:[%s1575_s24 + $0x30] sm:$0xf]  ;;  %v1024_v9 = vld [vmem:[%s1575_s24 + $0x3c] sm:$0xf0]  ;;  %v1050_v17 = vld [vmem:[%s1575_s24 + $0x58] sm:$0xf] }
  0x29   : > { %1301 = vmatpush.bf16.msra.mxu1 %v1256_v10  ;;  %1302 = vmatpush.bf16.msra.mxu2 %v1256_v10  ;;  %v1031_v7 = vor.u32 %v1242_v6, %v1030_v5  ;;  %v1247_v18 = vld [vmem:[%s1575_s24 + $0x68] sm:$0xf0]  ;;  %v1044_v21 = vld [vmem:[%s1575_s24 + $0x64] sm:$0xf0]  ;;  %v1070_v26 = vld [vmem:[%s1575_s24 + $0x80] sm:$0xf] }
  0x2a   : > { %701 = vmatpush.bf16.msra.mxu0 %v1256_v10  ;;  %788 = vmatpush.bf16.msra.mxu3 %v1280_v11  ;;  %v1058_v10 = vld [vmem:[%s1575_s24 + $0x60] sm:$0xf]  ;;  %v1027_v11 = vor.u32 %v1239_v8, %v1024_v9  ;;  %v1252_v27 = vld [vmem:[%s1575_s24 + $0x90] sm:$0xf0]  ;;  %v842_v0 = vld [vmem:[%s1706_s11 + $0x8] sm:$0xff] }
  0x2d   : > { %1303 = vmatpush.bf16.msra.mxu1 %v1255_v12  ;;  %1304 = vmatpush.bf16.msra.mxu2 %v1255_v12 }
  0x2e   : > { %702 = vmatpush.bf16.msra.mxu0 %v1255_v12  ;;  %789 = vmatpush.bf16.msra.mxu3 %v1279_v13  ;;  %v1248_v12 = vld [vmem:[%s1575_s24 + $0x70] sm:$0xf0]  ;;  %v1250_v13 = vld [vmem:[%s1575_s24 + $0x84] sm:$0xf] }
  0x2f   : > { %v1059_v15 = vor.u32 %v1248_v12, %v1058_v10 }
  0x31   : > { %1305 = vmatpush.bf16.msra.mxu1 %v1254_v14  ;;  %1306 = vmatpush.bf16.msra.mxu2 %v1254_v14 }
  0x32   : > { %703 = vmatpush.bf16.msra.mxu0 %v1254_v14  ;;  %790 = vmatpush.bf16.msra.mxu3 %v1278_v22  ;;  %v1072_v14 = vld [vmem:[%s1575_s24 + $0x94] sm:$0xf0] }
  0x33   : > { %v1075_v16 = vor.u32 %v1250_v13, %v1072_v14 }
  0x34   : > { %709 = vmatmul.bf16.vlgmr.msra.gmra.mxu1 %v1023_v23  ;;  %719 = vmatmul.bf16.vlgmr.msra.gmra.mxu2 %v1063_v24  ;;  %v1078_v23 = vld [vmem:[%s1575_s24 + $0x88] sm:$0xf]  ;;  %v1253_v24 = vld [vmem:[%s1575_s24 + $0x98] sm:$0xf0] }
  0x35   : > { %754 = vmatpush.bf16.msrb.mxu2 %v1277_v19  ;;  %725 = vmatpush.bf16.msrb.mxu1 %v1269_v20  ;;  %v1051_v19 = vor.u32 %v1247_v18, %v1050_v17  ;;  %v1244_v20 = vld [vmem:[%s1575_s24 + $0x54] sm:$0xf]  ;;  %v1079_v25 = vor.u32 %v1253_v24, %v1078_v23 }
  0x36   : > { %816 = vmatpush.bf16.msrb.mxu0 %v1289_v28  ;;  %791 = vmatmul.bf16.vlgmr.msra.gmra.mxu3 %v1015_v32  ;;  %v1047_v22 = vor.u32 %v1244_v20, %v1044_v21  ;;  %v1071_v28 = vor.u32 %v1252_v27, %v1070_v26 }
  0x37   : > { %704 = vmatmul.bf16.vlgmr.msra.gmra.mxu0 %v1003_v31 }
  0x39   : > { %755 = vmatpush.bf16.msrb.mxu2 %v1276_v29  ;;  %726 = vmatpush.bf16.msrb.mxu1 %v1268_v30  ;;  %v1249_v29 = vld [vmem:[%s1575_s24 + $0x7c] sm:$0xf]  ;;  %v1064_v30 = vld [vmem:[%s1575_s24 + $0x8c] sm:$0xf0]  ;;  %s1382_s24 = scalar_lea.hbm %s1381_s6, 64 }
  0x3a   : > { %817 = vmatpush.bf16.msrb.mxu0 %v1288_v33  ;;  %v1067_v31 = vor.u32 %v1249_v29, %v1064_v30  ;;  %p1383_p12 = scmp.ne.s32.totalorder %s1381_s6, %s1382_s24  ;;  %p1388_p2 = scmp.lt.s32.totalorder %s1386_s9, %s1382_s24 }
  0x3c   : > { %p1384_p13 = pnand %p1383_p12, %p1513_p4  ;;  %p1389_p3 = por %p1388_p2, %p1387_p1 }
  0x3d   : > { %756 = vmatpush.bf16.msrb.mxu2 %v1275_v34  ;;  %727 = vmatpush.bf16.msrb.mxu1 %v1267_v35 }
  0x3e   : > { %818 = vmatpush.bf16.msrb.mxu0 %v1287_v36  ;;  %p1385_p0 = pneg %p1384_p13 }
  0x40   : > { %p1390_p5 = pnand %p1389_p3, %p1385_p0 }
  0x41   : > { %757 = vmatpush.bf16.msrb.mxu2 %v1274_v37  ;;  %728 = vmatpush.bf16.msrb.mxu1 %v1266_v38 }
  0x42   : > { %819 = vmatpush.bf16.msrb.mxu0 %v1286_v41 }
  0x44   : > { %714 = vmatmul.bf16.gmra.mxu1 %v1043_v45 }
  0x45   : > { %758 = vmatpush.bf16.msrb.mxu2 %v1273_v42  ;;  %729 = vmatpush.bf16.msrb.mxu1 %v1265_v43  ;;  %v1699_v42 = vld [vmem:[%s1788_s2] ss:$0 sm:$0xff] }
  0x46   : > { %796 = vmatmul.bf16.gmra.mxu3 %v1035_v52  ;;  %v841_v52 = vld [vmem:[%s1706_s11] sm:$0xff] }
  0x47   : > { %1224 = vmatmul.msk.bf16.vlgmr.msrb.gmra.mxu0 %vm683_vm0, %v1019_v51 }
  0x49   : > { %759 = vmatpush.bf16.msrb.mxu2 %v1272_v49  ;;  %730 = vmatpush.bf16.msrb.mxu1 %v1264_v50 }
  0x4d   : > { %760 = vmatpush.bf16.msrb.mxu2 %v1271_v53  ;;  %731 = vmatpush.bf16.msrb.mxu1 %v1263_v54 }
  0x51   : > { %761 = vmatpush.bf16.msrb.mxu2 %v1270_v55  ;;  %732 = vmatpush.bf16.msrb.mxu1 %v1262_v56 }
  0x54   : > { %762 = vmatmul.bf16.vlgmr.msrb.gmra.mxu2 %v1011_v59  ;;  %733 = vmatmul.bf16.vlgmr.msrb.gmra.mxu1 %v1007_v63 }
  0x56   : > { %801 = vmatmul.bf16.gmra.mxu3 %v1055_v4 }
  0x57   : > { %1225 = vmatmul.msk.bf16.gmra.mxu0 %vm683_vm0, %v1039_v3 }
  0x64   : > { %767 = vmatmul.bf16.gmra.mxu2 %v1031_v7  ;;  %738 = vmatmul.bf16.gmra.mxu1 %v1027_v11  ;;  %v843_v11 = vld [vmem:[%s1706_s11 + $0x10] sm:$0xff] }
  0x66   : > { %806 = vmatmul.bf16.gmra.mxu3 %v1075_v16 }
  0x67   : > { %1226 = vmatmul.msk.bf16.gmra.mxu0 %vm683_vm0, %v1059_v15 }
  0x74   : > { %772 = vmatmul.bf16.gmra.mxu2 %v1051_v19  ;;  %743 = vmatmul.bf16.gmra.mxu1 %v1047_v22  ;;  %v844_v22 = vld [vmem:[%s1706_s11 + $0x18] sm:$0xff] }
  0x77   : > { %1227 = vmatmul.msk.bf16.gmra.mxu0 %vm683_vm0, %v1079_v25 }
  0x84   : > { %777 = vmatmul.bf16.gmra.mxu2 %v1071_v28  ;;  %748 = vmatmul.bf16.gmra.mxu1 %v1067_v31 }
  0xb1   : > { %v710_v32 = vpop.f32.mrf.mxu1 }
  0xb2   : > { %v711_v63 = vadd.f32 %v1699_v42, %v710_v32 }
  0xb4   : > { %v705_v33 = vpop.f32.mrf.mxu0 }
  0xb5   : > { %v706_v43 = vadd.f32 %v1699_v42, %v705_v33 }
  0xb7   : > { %v1690_v37 = vpop.f32.mrf.mxu2 }
  0xb9   : > { %v712_v34 = vpop.f32.mrf.mxu1  ;;  %v792_v38 = vpop.f32.mrf.mxu3 }
  0xba   : > { %v713_v10 = vadd.f32 %v1699_v42, %v712_v34  ;;  %v845_v34 = vld [vmem:[%s1706_s11 + $0x20] sm:$0xff] }
  0xbc   : > { %v707_v35 = vpop.f32.mrf.mxu0 }
  0xbd   : > { %v708_v51 = vadd.f32 %v1699_v42, %v707_v35 }
  0xbf   : > { %v1694_v41 = vpop.f32.mrf.mxu2 }
  0xc1   : > { %v715_v36 = vpop.f32.mrf.mxu1  ;;  %v794_v46 = vpop.f32.mrf.mxu3 }
  0xc2   : > { %v716_v21 = vadd.f32 %v1699_v42, %v715_v36 }
  0xc4   : > { %v821_v40 = vpop.f32.mrf.mxu0 }
  0xc9   : > { %v1692_v39 = vpop.f32.mrf.mxu1  ;;  %v797_v58 = vpop.f32.mrf.mxu3 }
  0xca   : > { %v718_v33 = vadd.f32 %v1699_v42, %v1692_v39 }
  0xcc   : > { %v823_v48 = vpop.f32.mrf.mxu0 }
  0xd1   : > { %v734_v44 = vpop.f32.mrf.mxu1  ;;  %v799_v8 = vpop.f32.mrf.mxu3 }
  0xd2   : > { %v735_v45 = vadd.f32 %v734_v44, %v706_v43 }
  0xd4   : > { %v826_v61 = vpop.f32.mrf.mxu0 }
  0xd7   : > { %v763_v47 = vpop.f32.mrf.mxu2 }
  0xd8   : > { %v764_v49 = vadd.f32 %v763_v47, %v735_v45 }
  0xd9   : > { %v736_v54 = vpop.f32.mrf.mxu1  ;;  %v802_v23 = vpop.f32.mrf.mxu3 }
  0xda   : > { %v793_v50 = vadd.f32 %v792_v38, %v764_v49  ;;  %v737_v55 = vadd.f32 %v736_v54, %v708_v51  ;;  %v721_v49 = vadd.f32 %v1699_v42, %v1690_v37  ;;  %v847_v37 = vld [vmem:[%s1706_s11 + $0x30] sm:$0xff] }
  0xdc   : > { %v822_v53 = vadd.f32 %v821_v40, %v793_v50  ;;  %v828_v12 = vpop.f32.mrf.mxu0  ;;  %v846_v50 = vld [vmem:[%s1706_s11 + $0x28] sm:$0xff] }
  0xde   : > { %v849_v56 = vadd.f32 %v841_v52, %v822_v53 }
  0xdf   : > { %v765_v57 = vpop.f32.mrf.mxu2 }
  0xe0   : > { %v857_v59 = vmax.f32 %v849_v56, 0.0  ;;  %v766_v60 = vadd.f32 %v765_v57, %v737_v55 }
  0xe1   : > { %v739_v2 = vpop.f32.mrf.mxu1  ;;  %v804_v38 = vpop.f32.mrf.mxu3 }
  0xe2   : > { %865 = vst.msk [vmem:[%s1713_s5] sm:$0xff] %vm683_vm0, %v857_v59  ;;  %v795_v62 = vadd.f32 %v794_v46, %v766_v60  ;;  %v740_v3 = vadd.f32 %v739_v2, %v711_v63  ;;  %v723_v60 = vadd.f32 %v1699_v42, %v1694_v41 }
  0xe4   : > { %v824_v1 = vadd.f32 %v823_v48, %v795_v62  ;;  %v831_v26 = vpop.f32.mrf.mxu0 }
  0xe6   : > { %v850_v4 = vadd.f32 %v842_v0, %v824_v1 }
  0xe7   : > { %v768_v5 = vpop.f32.mrf.mxu2 }
  0xe8   : > { %v858_v6 = vmax.f32 %v850_v4, 0.0  ;;  %v769_v7 = vadd.f32 %v768_v5, %v740_v3  ;;  %v848_v5 = vld [vmem:[%s1706_s11 + $0x38] sm:$0xff] }
  0xe9   : > { %v741_v14 = vpop.f32.mrf.mxu1  ;;  %v807_v54 = vpop.f32.mrf.mxu3 }
  0xea   : > { %866 = vst.msk [vmem:[%s1713_s5 + $0x8] sm:$0xff] %vm683_vm0, %v858_v6  ;;  %v798_v9 = vadd.f32 %v797_v58, %v769_v7  ;;  %v742_v15 = vadd.f32 %v741_v14, %v713_v10 }
  0xec   : > { %v827_v13 = vadd.f32 %v826_v61, %v798_v9  ;;  %v833_v44 = vpop.f32.mrf.mxu0 }
  0xee   : > { %v851_v16 = vadd.f32 %v843_v11, %v827_v13 }
  0xef   : > { %v770_v17 = vpop.f32.mrf.mxu2 }
  0xf0   : > { %v859_v18 = vmax.f32 %v851_v16, 0.0  ;;  %v771_v19 = vadd.f32 %v770_v17, %v742_v15 }
  0xf1   : > { %v744_v25 = vpop.f32.mrf.mxu1  ;;  %v809_v4 = vpop.f32.mrf.mxu3 }
  0xf2   : > { %867 = vst.msk [vmem:[%s1713_s5 + $0x10] sm:$0xff] %vm683_vm0, %v859_v18  ;;  %v800_v20 = vadd.f32 %v799_v8, %v771_v19  ;;  %v745_v27 = vadd.f32 %v744_v25, %v716_v21 }
  0xf4   : > { %v829_v24 = vadd.f32 %v828_v12, %v800_v20  ;;  %v836_v58 = vpop.f32.mrf.mxu0 }
  0xf6   : > { %v852_v28 = vadd.f32 %v844_v22, %v829_v24 }
  0xf7   : > { %v773_v29 = vpop.f32.mrf.mxu2 }
  0xf8   : > { %v860_v30 = vmax.f32 %v852_v28, 0.0  ;;  %v774_v31 = vadd.f32 %v773_v29, %v745_v27 }
  0xf9   : > { %v746_v36 = vpop.f32.mrf.mxu1 }
  0xfa   : > { %868 = vst.msk [vmem:[%s1713_s5 + $0x18] sm:$0xff] %vm683_vm0, %v860_v30  ;;  %v803_v32 = vadd.f32 %v802_v23, %v774_v31  ;;  %v747_v40 = vadd.f32 %v746_v36, %v718_v33 }
  0xfc   : > { %v832_v35 = vadd.f32 %v831_v26, %v803_v32  ;;  %v838_v42 = vpop.f32.mrf.mxu0 }
  0xfe   : > { %v853_v43 = vadd.f32 %v845_v34, %v832_v35 }
  0xff   : > { %v775_v45 = vpop.f32.mrf.mxu2 }
 0x100   : > { %v861_v46 = vmax.f32 %v853_v43, 0.0  ;;  %v776_v47 = vadd.f32 %v775_v45, %v747_v40 }
 0x101   : > { %v749_v51 = vpop.f32.mrf.mxu1 }
 0x102   : > { %869 = vst.msk [vmem:[%s1713_s5 + $0x20] sm:$0xff] %vm683_vm0, %v861_v46  ;;  %v805_v48 = vadd.f32 %v804_v38, %v776_v47  ;;  %v750_v52 = vadd.f32 %v749_v51, %v721_v49 }
 0x104   : > { %v834_v39 = vadd.f32 %v833_v44, %v805_v48 }
 0x106   : > { %v854_v53 = vadd.f32 %v846_v50, %v834_v39 }
 0x107   : > { %v778_v55 = vpop.f32.mrf.mxu2 }
 0x108   : > { %v862_v56 = vmax.f32 %v854_v53, 0.0  ;;  %v779_v57 = vadd.f32 %v778_v55, %v750_v52 }
 0x109   : > { %v751_v62 = vpop.f32.mrf.mxu1 }
 0x10a   : > { %870 = vst.msk [vmem:[%s1713_s5 + $0x28] sm:$0xff] %vm683_vm0, %v862_v56  ;;  %v808_v59 = vadd.f32 %v807_v54, %v779_v57  ;;  %v752_v63 = vadd.f32 %v751_v62, %v723_v60 }
 0x10c   : > { %v837_v61 = vadd.f32 %v836_v58, %v808_v59 }
 0x10e   : > { %v855_v0 = vadd.f32 %v847_v37, %v837_v61 }
 0x10f   : > { %v780_v1 = vpop.f32.mrf.mxu2 }
 0x110   : > { %v863_v2 = vmax.f32 %v855_v0, 0.0  ;;  %v781_v3 = vadd.f32 %v780_v1, %v752_v63 }
 0x112   : > { %871 = vst.msk [vmem:[%s1713_s5 + $0x30] sm:$0xff] %vm683_vm0, %v863_v2  ;;  %v810_v41 = vadd.f32 %v809_v4, %v781_v3 }
 0x114   : > { %v839_v6 = vadd.f32 %v838_v42, %v810_v41 }
 0x116   : > { %v856_v7 = vadd.f32 %v848_v5, %v839_v6 }
 0x118   : > { %v864_v8 = vmax.f32 %v856_v7, 0.0 }
 0x11a   : > { %872 = vst.msk [vmem:[%s1713_s5 + $0x38] sm:$0xff] %vm683_vm0, %v864_v8 }
 0x11b   : > { %1393 = shalt.err (!%p1390_p5)
}
 0x11c   : > { %s1446_s12 = smov 128   ;;  %s1447_s13 = smov 8  }
 0x11d   : > { %1308 = dma.vmem_to_hbm [thread:$0]  (%p1513_p4), %s889_s29, 1024, %s891_s30, %s874_s18, %s1446_s12, %s1446_s12, %s1447_s13  }
 0x11e PF: > { %p1314_p6 = scmp.ge.s32.totalorder %s1444_s20, 2  ;;  %s905_s5 = sand.u32 1, %s1424_s15  }
 0x11f   : > { %s906_s14 = scalar_lea.sflag [#allocation3], %s905_s5 }
 0x120   : > { %p1311_p7 = pnand %p1314_p6, %p1520_p8 }
 0x122   : > { %p1312_p9 = pneg %p1311_p7 }
 0x124   : > { %1419 = dma.done.wait (%p1312_p9), %s906_s14, 1024  }
 0x125   : > { %1421 = vsyncadd (%p1312_p9), %s906_s14, 4294966272  ;;  %s17_s20 = sadd.s32 1, %s1444_s20   ;;  %s1793_s15 = smov %s1428_s16 }
 0x126   : > { %p14_p10 = scmp.ge.s32.totalorder %s17_s20, 4   ;;  %s1794_s16 = smov %s1432_s17 }
 0x127   : > { %s1795_s17 = smov %s1526_s28  ;;  %s1796_s18 = smov %s1440_s19 }
 0x128   : > { %s1797_s19 = smov %s1799_s23  ;;  %16 = sbr.rel (!%p14_p10) target bundleno = 4 (0x4), region = 74 }
 0x12d   :  { %912 = vsyncpa [#allocation3], 1 }
 0x12e   :  { %914 = vsyncpa [#allocation3 + $0x1], 1 }

</bundles_post_ra>
